<compile_context>
chip_gen: v6e
topology: v6e:2x2x1
jax: 0.10.0
libtpu: 0.0.40
codegen_flags: <defaults>
</compile_context>

<pallas_src>
import jax
import jax.numpy as jnp
from jax.experimental import pallas as pl
from jax.experimental.pallas import tpu as pltpu

NUM_CLASSES = 5


# ----------------------------------------------------------------------------
# Trace-time constant builders (all hot math runs inside the Pallas kernel)
# ----------------------------------------------------------------------------
def _bilinear_matrix(in_size, out_size):
    """PyTorch F.interpolate(mode='bilinear', align_corners=False) weights."""
    scale = in_size / out_size
    dst = jnp.arange(out_size, dtype=jnp.float32)
    src = jnp.maximum((dst + 0.5) * scale - 0.5, 0.0)
    i0 = jnp.clip(jnp.floor(src).astype(jnp.int32), 0, in_size - 1)
    i1 = jnp.minimum(i0 + 1, in_size - 1)
    lam = src - i0.astype(jnp.float32)
    return ((1.0 - lam)[:, None] * jax.nn.one_hot(i0, in_size, dtype=jnp.float32)
            + lam[:, None] * jax.nn.one_hot(i1, in_size, dtype=jnp.float32))


def _tap_gather_matrices(hin, win, k, stride, pad):
    """0/1 matrices G_t (hin*win, ho*wo), one per conv tap (encode stride+pad)."""
    ho = (hin + 2 * pad - k) // stride + 1
    wo = (win + 2 * pad - k) // stride + 1
    mats = []
    for di in range(k):
        for dj in range(k):
            ih = stride * jnp.arange(ho) + di - pad
            iw = stride * jnp.arange(wo) + dj - pad
            vh = ((ih >= 0) & (ih < hin)).astype(jnp.float32)
            vw = ((iw >= 0) & (iw < win)).astype(jnp.float32)
            rh = jax.nn.one_hot(jnp.clip(ih, 0, hin - 1), hin,
                                dtype=jnp.float32) * vh[:, None]   # (ho, hin)
            rw = jax.nn.one_hot(jnp.clip(iw, 0, win - 1), win,
                                dtype=jnp.float32) * vw[:, None]   # (wo, win)
            mats.append(jnp.kron(rh, rw).T)                        # (hin*win, ho*wo)
    return mats, (ho, wo)


def _conv_layer_matrix(w, hin, win, stride, pad):
    """Fold a conv (weights + stride + zero padding) into one dense matrix.

    Returns M of shape (Cin*S_in, Cout*S_out) such that, for a channel-major
    flattened activation vec_in[ci*S_in + si],
        vec_out = vec_in @ M
    is the flattened conv output vec_out[co*S_out + so].  Every entry of M is
    either 0 or exactly one conv weight (a given (si, so) pair corresponds to
    at most one tap), so casting M to bf16 adds no rounding beyond casting the
    weights themselves.
    """
    cout, cin, k, _ = w.shape
    gs, (ho, wo) = _tap_gather_matrices(hin, win, k, stride, pad)
    m = jnp.zeros((cin * hin * win, cout * ho * wo), jnp.float32)
    t = 0
    for di in range(k):
        for dj in range(k):
            m = m + jnp.kron(w[:, :, di, dj].T, gs[t])   # (Cin*Sin, Cout*Sout)
            t += 1
    return m, (ho, wo)


def _head_matrix(w, b, hf, wf, hout, wout):
    """Fold 1x1-conv -> bias -> bilinear upsample into one matrix + bias."""
    nc, c3 = w.shape[:2]
    up = jnp.kron(_bilinear_matrix(hf, hout),
                  _bilinear_matrix(wf, wout)).T            # (hf*wf, hout*wout)
    m = jnp.kron(w.reshape(nc, c3).T, up)                  # (C3*S3, NC*H*W)
    bias = jnp.kron(b, jnp.sum(up, axis=0))                # exact (rows sum to 1)
    return m, bias


# ----------------------------------------------------------------------------
# Fused Pallas kernel: 4 MXU matmuls, batch in the M dimension, every
# intermediate activation stays on-chip.
# ----------------------------------------------------------------------------
def _fused_deeplab_kernel(x_ref,
                          m1_ref, b1_ref, m2_ref, b2_ref,
                          m3_ref, b3_ref, m4_ref, b4_ref,
                          o_ref):
    def layer(a_bf16, m_ref, b_ref, relu):
        y = jnp.dot(a_bf16, m_ref[...],
                    preferred_element_type=jnp.float32) + b_ref[...]
        return jnp.maximum(y, 0.0) if relu else y

    a = x_ref[...].astype(jnp.bfloat16)                       # (B, Cin*H*W)
    a = layer(a, m1_ref, b1_ref, True).astype(jnp.bfloat16)   # (B, C1*S1)
    a = layer(a, m2_ref, b2_ref, True).astype(jnp.bfloat16)   # (B, C2*S2)
    a = layer(a, m3_ref, b3_ref, True).astype(jnp.bfloat16)   # (B, C3*S3)
    o_ref[...] = layer(a, m4_ref, b4_ref, False)              # (B, NC*H*W) f32


# ----------------------------------------------------------------------------
# Synthetic DeepLabModelZooModel params + forward wrapper
# ----------------------------------------------------------------------------
def init_params(key, cin=4, num_classes=NUM_CLASSES):
    ks = jax.random.split(key, 8)

    def conv_init(kw_, kb_, cout, cin_, k):
        w = 0.1 * jax.random.normal(kw_, (cout, cin_, k, k), dtype=jnp.float32)
        b = 0.01 * jax.random.normal(kb_, (cout,), dtype=jnp.float32)
        return w, b

    params = {}
    # backbone (feature_detection_layers): two strided 3x3 convs, /4 downsample
    params["bb_w1"], params["bb_b1"] = conv_init(ks[0], ks[1], 8, cin, 3)
    params["bb_w2"], params["bb_b2"] = conv_init(ks[2], ks[3], 16, 8, 3)
    # decoder (classifier head): 3x3 conv + 1x1 projection to num_classes
    params["dec_w1"], params["dec_b1"] = conv_init(ks[4], ks[5], 16, 16, 3)
    params["dec_w2"], params["dec_b2"] = conv_init(ks[6], ks[7], num_classes, 16, 1)
    return params


def deeplab_forward(x, params, *, compute_dtype=jnp.bfloat16, max_batch_tile=8):
    """Mirrors DeepLabModelZooModel.forward(x); NCHW in, NCHW out."""
    n, cin, h, w = x.shape
    nc = params["dec_w2"].shape[0]

    # Fold every layer into a dense matrix at trace time (weights + stride +
    # padding gather; head = 1x1 conv + bias + bilinear upsample).
    m1, (h1, w1) = _conv_layer_matrix(params["bb_w1"], h, w, 2, 1)
    m2, (h2, w2) = _conv_layer_matrix(params["bb_w2"], h1, w1, 2, 1)
    m3, (h3, w3) = _conv_layer_matrix(params["dec_w1"], h2, w2, 1, 1)
    m4, b4 = _head_matrix(params["dec_w2"], params["dec_b2"], h3, w3, h, w)

    def bias_row(b, s):
        return jnp.repeat(b, s)[None, :].astype(jnp.float32)

    consts = (
        m1.astype(compute_dtype), bias_row(params["bb_b1"], h1 * w1),
        m2.astype(compute_dtype), bias_row(params["bb_b2"], h2 * w2),
        m3.astype(compute_dtype), bias_row(params["dec_b1"], h3 * w3),
        m4.astype(compute_dtype), b4[None, :].astype(jnp.float32),
    )

    # Batch is the matmul M dimension.  Small batches run as ONE grid step (no
    # per-step overhead); larger batches tile the batch axis with a "parallel"
    # grid (>= 2 steps also keeps both v7x TensorCores busy).
    b_tile = n if n <= max_batch_tile else max_batch_tile
    n_pad = pl.cdiv(n, b_tile) * b_tile
    x_vec = x.reshape(n, cin * h * w)          # channel-major, no layout shuffles
    if n_pad != n:
        x_vec = jnp.pad(x_vec, ((0, n_pad - n), (0, 0)))
    grid = (n_pad // b_tile,)

    # VMEM budget from the actual footprint (double-buffered operands +
    # output tile) plus headroom, instead of a blanket 32 MiB.
    def nbytes(a):
        return int(a.size) * a.dtype.itemsize
    out_tile_bytes = b_tile * nc * h * w * 4
    vmem_limit = 2 * (sum(nbytes(c) for c in consts)
                      + b_tile * cin * h * w * 4 + out_tile_bytes) + (4 << 20)

    out = pl.pallas_call(
        _fused_deeplab_kernel,
        out_shape=jax.ShapeDtypeStruct((n_pad, nc * h * w), jnp.float32),
        grid=grid,
        in_specs=[pl.BlockSpec((b_tile, cin * h * w), lambda i: (i, 0))]
                 + [pl.BlockSpec(c.shape, lambda i: (0, 0)) for c in consts],
        out_specs=pl.BlockSpec((b_tile, nc * h * w), lambda i: (i, 0)),
        compiler_params=pltpu.CompilerParams(
            dimension_semantics=("parallel",),
            vmem_limit_bytes=int(vmem_limit)),
    )(x_vec, *consts)
    return out[:n].reshape(n, nc, h, w)


# ----------------------------------------------------------------------------
# Pure-XLA f32 reference (PyTorch-equivalent ops) for validation
# ----------------------------------------------------------------------------
def _reference_forward(x, params):
    def conv(h, w, b, stride, pad, relu):
        out = jax.lax.conv_general_dilated(
            h, w, window_strides=(stride, stride),
            padding=[(pad, pad), (pad, pad)],
            dimension_numbers=("NCHW", "OIHW", "NCHW"))
        out = out + b[None, :, None, None]
        return jnp.maximum(out, 0.0) if relu else out

    h = conv(x, params["bb_w1"], params["bb_b1"], 2, 1, True)
    h = conv(h, params["bb_w2"], params["bb_b2"], 2, 1, True)
    h = conv(h, params["dec_w1"], params["dec_b1"], 1, 1, True)
    h = conv(h, params["dec_w2"], params["dec_b2"], 1, 0, False)
    wh = _bilinear_matrix(h.shape[2], x.shape[2])
    ww = _bilinear_matrix(h.shape[3], x.shape[3])
    return jnp.einsum("oh,nchw,pw->ncop", wh, h, ww)


if __name__ == "__main__":
    x = jax.random.normal(jax.random.PRNGKey(0), (2, 4, 16, 16), dtype=jnp.float32)
    params = init_params(jax.random.PRNGKey(1))

    out = jax.jit(deeplab_forward)(x, params)
    jax.block_until_ready(out)

    assert out.shape == (2, NUM_CLASSES, 16, 16), out.shape
    assert out.dtype == jnp.float32

    ref = _reference_forward(x, params)
    err = float(jnp.max(jnp.abs(out - ref)))
    assert err < 2e-2, f"max abs error vs f32 reference too large: {err}"

    print("KERNEL_OK")
</pallas_src>

<mosaic_0001>
module attributes {stable_mosaic.version = 11 : i64} {
  func.func @_fused_deeplab_kernel(%arg0: i32, %arg1: memref<2x1024xf32, #tpu.memory_space<vmem>>, %arg2: memref<1024x512xbf16, #tpu.memory_space<vmem>>, %arg3: memref<1x512xf32, #tpu.memory_space<vmem>>, %arg4: memref<512x256xbf16, #tpu.memory_space<vmem>>, %arg5: memref<1x256xf32, #tpu.memory_space<vmem>>, %arg6: memref<256x256xbf16, #tpu.memory_space<vmem>>, %arg7: memref<1x256xf32, #tpu.memory_space<vmem>>, %arg8: memref<256x1280xbf16, #tpu.memory_space<vmem>>, %arg9: memref<1x1280xf32, #tpu.memory_space<vmem>>, %arg10: memref<2x1280xf32, #tpu.memory_space<vmem>>) attributes {dimension_semantics = [#tpu.dimension_semantics<parallel>], iteration_bounds = array<i64: 1>, scalar_prefetch = 0 : i64, scratch_operands = 0 : i64, tpu.core_type = #tpu.core_type<tc>, window_params = [{transform_indices = @transform_0, window_bounds = array<i64: 2, 1024>}, {pipeline_mode = #tpu.pipeline_mode<synchronous>, transform_indices = @transform_1, window_bounds = array<i64: 1024, 512>}, {pipeline_mode = #tpu.pipeline_mode<synchronous>, transform_indices = @transform_2, window_bounds = array<i64: 1, 512>}, {pipeline_mode = #tpu.pipeline_mode<synchronous>, transform_indices = @transform_3, window_bounds = array<i64: 512, 256>}, {pipeline_mode = #tpu.pipeline_mode<synchronous>, transform_indices = @transform_4, window_bounds = array<i64: 1, 256>}, {pipeline_mode = #tpu.pipeline_mode<synchronous>, transform_indices = @transform_5, window_bounds = array<i64: 256, 256>}, {pipeline_mode = #tpu.pipeline_mode<synchronous>, transform_indices = @transform_6, window_bounds = array<i64: 1, 256>}, {pipeline_mode = #tpu.pipeline_mode<synchronous>, transform_indices = @transform_7, window_bounds = array<i64: 256, 1280>}, {pipeline_mode = #tpu.pipeline_mode<synchronous>, transform_indices = @transform_8, window_bounds = array<i64: 1, 1280>}, {transform_indices = @transform_9, window_bounds = array<i64: 2, 1280>}]} {
    %c0 = arith.constant 0 : index
    %c0_0 = arith.constant 0 : index
    %0 = vector.load %arg1[%c0, %c0_0] : memref<2x1024xf32, #tpu.memory_space<vmem>>, vector<2x1024xf32>
    %1 = arith.truncf %0 : vector<2x1024xf32> to vector<2x1024xbf16>
    %c0_1 = arith.constant 0 : index
    %c0_2 = arith.constant 0 : index
    %2 = vector.load %arg2[%c0_1, %c0_2] : memref<1024x512xbf16, #tpu.memory_space<vmem>>, vector<1024x512xbf16>
    %cst = arith.constant dense<0.000000e+00> : vector<2x512xf32>
    %3 = tpu.matmul %1, %2, %cst {dimension_numbers = #tpu.dot_dimension_numbers<[1], [0], [0], [1], [0, 0, 1, 1], [], []>} : vector<2x1024xbf16>, vector<1024x512xbf16>, vector<2x512xf32> -> vector<2x512xf32>
    %c0_3 = arith.constant 0 : index
    %c0_4 = arith.constant 0 : index
    %4 = vector.load %arg3[%c0_3, %c0_4] : memref<1x512xf32, #tpu.memory_space<vmem>>, vector<1x512xf32>
    %5 = vector.broadcast %4 : vector<1x512xf32> to vector<2x512xf32>
    %6 = arith.addf %3, %5 : vector<2x512xf32>
    %cst_5 = arith.constant 0.000000e+00 : f32
    %7 = vector.broadcast %cst_5 : f32 to vector<2x512xf32>
    %8 = arith.maximumf %6, %7 : vector<2x512xf32>
    %9 = arith.truncf %8 : vector<2x512xf32> to vector<2x512xbf16>
    %c0_6 = arith.constant 0 : index
    %c0_7 = arith.constant 0 : index
    %10 = vector.load %arg4[%c0_6, %c0_7] : memref<512x256xbf16, #tpu.memory_space<vmem>>, vector<512x256xbf16>
    %cst_8 = arith.constant dense<0.000000e+00> : vector<2x256xf32>
    %11 = tpu.matmul %9, %10, %cst_8 {dimension_numbers = #tpu.dot_dimension_numbers<[1], [0], [0], [1], [0, 0, 1, 1], [], []>} : vector<2x512xbf16>, vector<512x256xbf16>, vector<2x256xf32> -> vector<2x256xf32>
    %c0_9 = arith.constant 0 : index
    %c0_10 = arith.constant 0 : index
    %12 = vector.load %arg5[%c0_9, %c0_10] : memref<1x256xf32, #tpu.memory_space<vmem>>, vector<1x256xf32>
    %13 = vector.broadcast %12 : vector<1x256xf32> to vector<2x256xf32>
    %14 = arith.addf %11, %13 : vector<2x256xf32>
    %cst_11 = arith.constant 0.000000e+00 : f32
    %15 = vector.broadcast %cst_11 : f32 to vector<2x256xf32>
    %16 = arith.maximumf %14, %15 : vector<2x256xf32>
    %17 = arith.truncf %16 : vector<2x256xf32> to vector<2x256xbf16>
    %c0_12 = arith.constant 0 : index
    %c0_13 = arith.constant 0 : index
    %18 = vector.load %arg6[%c0_12, %c0_13] : memref<256x256xbf16, #tpu.memory_space<vmem>>, vector<256x256xbf16>
    %cst_14 = arith.constant dense<0.000000e+00> : vector<2x256xf32>
    %19 = tpu.matmul %17, %18, %cst_14 {dimension_numbers = #tpu.dot_dimension_numbers<[1], [0], [0], [1], [0, 0, 1, 1], [], []>} : vector<2x256xbf16>, vector<256x256xbf16>, vector<2x256xf32> -> vector<2x256xf32>
    %c0_15 = arith.constant 0 : index
    %c0_16 = arith.constant 0 : index
    %20 = vector.load %arg7[%c0_15, %c0_16] : memref<1x256xf32, #tpu.memory_space<vmem>>, vector<1x256xf32>
    %21 = vector.broadcast %20 : vector<1x256xf32> to vector<2x256xf32>
    %22 = arith.addf %19, %21 : vector<2x256xf32>
    %cst_17 = arith.constant 0.000000e+00 : f32
    %23 = vector.broadcast %cst_17 : f32 to vector<2x256xf32>
    %24 = arith.maximumf %22, %23 : vector<2x256xf32>
    %25 = arith.truncf %24 : vector<2x256xf32> to vector<2x256xbf16>
    %c0_18 = arith.constant 0 : index
    %c0_19 = arith.constant 0 : index
    %26 = vector.load %arg8[%c0_18, %c0_19] : memref<256x1280xbf16, #tpu.memory_space<vmem>>, vector<256x1280xbf16>
    %cst_20 = arith.constant dense<0.000000e+00> : vector<2x1280xf32>
    %27 = tpu.matmul %25, %26, %cst_20 {dimension_numbers = #tpu.dot_dimension_numbers<[1], [0], [0], [1], [0, 0, 1, 1], [], []>} : vector<2x256xbf16>, vector<256x1280xbf16>, vector<2x1280xf32> -> vector<2x1280xf32>
    %c0_21 = arith.constant 0 : index
    %c0_22 = arith.constant 0 : index
    %28 = vector.load %arg9[%c0_21, %c0_22] : memref<1x1280xf32, #tpu.memory_space<vmem>>, vector<1x1280xf32>
    %29 = vector.broadcast %28 : vector<1x1280xf32> to vector<2x1280xf32>
    %30 = arith.addf %27, %29 : vector<2x1280xf32>
    %c0_23 = arith.constant 0 : index
    %c0_24 = arith.constant 0 : index
    %31 = vector.load %arg10[%c0_23, %c0_24] : memref<2x1280xf32, #tpu.memory_space<vmem>>, vector<2x1280xf32>
    tpu.vector_store %arg10[%c0_23, %c0_24], %30 {strides = array<i32>} : memref<2x1280xf32, #tpu.memory_space<vmem>>, vector<2x1280xf32>,
    return
  }
  func.func @transform_0(%arg0: i32) -> (i32, i32) {
    %c0_i32 = arith.constant 0 : i32
    %c0_i32_0 = arith.constant 0 : i32
    return %arg0, %c0_i32 : i32, i32
  }
  func.func @transform_1(%arg0: i32) -> (i32, i32) {
    %c0_i32 = arith.constant 0 : i32
    %c0_i32_0 = arith.constant 0 : i32
    %c0_i32_1 = arith.constant 0 : i32
    return %c0_i32, %c0_i32_0 : i32, i32
  }
  func.func @transform_2(%arg0: i32) -> (i32, i32) {
    %c0_i32 = arith.constant 0 : i32
    %c0_i32_0 = arith.constant 0 : i32
    %c0_i32_1 = arith.constant 0 : i32
    return %c0_i32, %c0_i32_0 : i32, i32
  }
  func.func @transform_3(%arg0: i32) -> (i32, i32) {
    %c0_i32 = arith.constant 0 : i32
    %c0_i32_0 = arith.constant 0 : i32
    %c0_i32_1 = arith.constant 0 : i32
    return %c0_i32, %c0_i32_0 : i32, i32
  }
  func.func @transform_4(%arg0: i32) -> (i32, i32) {
    %c0_i32 = arith.constant 0 : i32
    %c0_i32_0 = arith.constant 0 : i32
    %c0_i32_1 = arith.constant 0 : i32
    return %c0_i32, %c0_i32_0 : i32, i32
  }
  func.func @transform_5(%arg0: i32) -> (i32, i32) {
    %c0_i32 = arith.constant 0 : i32
    %c0_i32_0 = arith.constant 0 : i32
    %c0_i32_1 = arith.constant 0 : i32
    return %c0_i32, %c0_i32_0 : i32, i32
  }
  func.func @transform_6(%arg0: i32) -> (i32, i32) {
    %c0_i32 = arith.constant 0 : i32
    %c0_i32_0 = arith.constant 0 : i32
    %c0_i32_1 = arith.constant 0 : i32
    return %c0_i32, %c0_i32_0 : i32, i32
  }
  func.func @transform_7(%arg0: i32) -> (i32, i32) {
    %c0_i32 = arith.constant 0 : i32
    %c0_i32_0 = arith.constant 0 : i32
    %c0_i32_1 = arith.constant 0 : i32
    return %c0_i32, %c0_i32_0 : i32, i32
  }
  func.func @transform_8(%arg0: i32) -> (i32, i32) {
    %c0_i32 = arith.constant 0 : i32
    %c0_i32_0 = arith.constant 0 : i32
    %c0_i32_1 = arith.constant 0 : i32
    return %c0_i32, %c0_i32_0 : i32, i32
  }
  func.func @transform_9(%arg0: i32) -> (i32, i32) {
    %c0_i32 = arith.constant 0 : i32
    %c0_i32_0 = arith.constant 0 : i32
    return %arg0, %c0_i32 : i32, i32
  }
}

</mosaic_0001>

<bundles_post_ra>
// kernel: mul.729
= control target key start
LH: loop header
LB: loop body
LE: loop exit
PB: predicated region body
PF: predicated region fallthrough
CT: control target
= control target key end

     0   :  { %s7_s6 = smov 3  ;;  %s21_s9 = smov 3  ;;  %vm4_vm0 = vcmask 130048   ;;  %vm11_vm1 = vcmask 1048448   ;;  %vm18_vm2 = vcmask 917248   ;;  %vm25_vm3 = vcmask 786048   ;;  %s121_s0 = inlined_call_operand.vmem [shape: f32[16,16], index: 0, kind: input, shape index: {}]   ;;  %s122_s1 = inlined_call_operand.vmem [shape: f32[256], index: 1, kind: output, shape index: {}]  }
   0x1   :  { %v63_v0 = vld [vmem:[%s121_s0 + $0x7] ss:$8 sm:%s7_s6]   ;;  %s77_s10 = smov 112   ;;  %v65_v1 = vld [vmem:[%s121_s0 + $0x5] ss:$8 sm:%s21_s9]   ;;  %s14_s13 = smov 3 }
   0x2   :  { %9 = vrot.lane.b32.xlu0 %v63_v0, %s77_s10  ;;  %s78_s14 = smov 80   ;;  %v64_v2 = vld [vmem:[%s121_s0 + $0x6] ss:$8 sm:%s14_s13]   ;;  %s28_s17 = smov 3  ;;  %vm32_vm4 = vcmask 654848   ;;  %vm39_vm5 = vcmask 523648  }
   0x3   :  { %23 = vrot.lane.b32.xlu1 %v65_v1, %s78_s14  ;;  %v66_v3 = vld [vmem:[%s121_s0 + $0x4] ss:$8 sm:%s28_s17]   ;;  %s35_s20 = smov 3  ;;  %s42_s21 = smov 3  ;;  %vm46_vm6 = vcmask 392448   ;;  %vm53_vm7 = vcmask 261248  }
   0x4   :  { %s79_s22 = smov 96   ;;  %s80_s23 = smov 64   ;;  %v67_v4 = vld [vmem:[%s121_s0 + $0x3] ss:$8 sm:%s35_s20]   ;;  %v68_v5 = vld [vmem:[%s121_s0 + $0x2] ss:$8 sm:%s42_s21]  }
   0x5   :  { %s2_s26 = smov 3  ;;  %s49_s29 = smov 3 }
   0x6   :  { %16 = vrot.lane.b32.xlu0 %v64_v2, %s79_s22  ;;  %v3_v6 = vld [vmem:[%s121_s0] ss:$8 sm:%s2_s26]   ;;  %s81_s3 = smov 48   ;;  %s82_s4 = smov 32  }
   0x7   :  { %30 = vrot.lane.b32.xlu1 %v66_v3, %s80_s23  ;;  %5 = vst.msk [vmem:[#allocation0] sm:$0x3] %vm4_vm0, %v3_v6   ;;  %v69_v7 = vld [vmem:[%s121_s0 + $0x1] ss:$8 sm:%s49_s29]   ;;  %s83_s0 = smov 16  }
   0xa   :  { %37 = vrot.lane.b32.xlu0 %v67_v4, %s81_s3 }
   0xb   :  { %44 = vrot.lane.b32.xlu1 %v68_v5, %s82_s4 }
   0xe   :  { %51 = vrot.lane.b32.xlu0 %v69_v7, %s83_s0 }
  0x74   :  { %v10_v8 = vpop.permute.xlu0 %9  }
  0x75   :  { %12 = vst.msk [vmem:[#allocation0] sm:$0x3] %vm11_vm1, %v10_v8   ;;  %v24_v9 = vpop.permute.xlu1 %23  }
  0x78   :  { %v17_v10 = vpop.permute.xlu0 %16  }
  0x79   :  { %19 = vst.msk [vmem:[#allocation0] sm:$0x3] %vm18_vm2, %v17_v10   ;;  %v31_v11 = vpop.permute.xlu1 %30  }
  0x7a   :  { %26 = vst.msk [vmem:[#allocation0] sm:$0x3] %vm25_vm3, %v24_v9  }
  0x7b   :  { %33 = vst.msk [vmem:[#allocation0] sm:$0x3] %vm32_vm4, %v31_v11  }
  0x7c   :  { %v38_v12 = vpop.permute.xlu0 %37  }
  0x7d   :  { %40 = vst.msk [vmem:[#allocation0] sm:$0x3] %vm39_vm5, %v38_v12   ;;  %v45_v13 = vpop.permute.xlu1 %44  }
  0x7e   :  { %47 = vst.msk [vmem:[#allocation0] sm:$0x3] %vm46_vm6, %v45_v13  }
  0x80   :  { %v52_v14 = vpop.permute.xlu0 %51  }
  0x81   :  { %54 = vst.msk [vmem:[#allocation0] sm:$0x3] %vm53_vm7, %v52_v14  }
  0x88   :  { %v59_v15 = vld [vmem:[#allocation0] sm:$0x3] }
  0x89   :  { %62 = vst [vmem:[%s122_s1] sm:$0x3] %v59_v15 }

// kernel: deeplab_forward.1
= control target key start
LH: loop header
LB: loop body
LE: loop exit
PB: predicated region body
PF: predicated region fallthrough
CT: control target
= control target key end

     0   :  { %v5276_v36 = vmov 1983009808   ;;  %v40_v38 = vlaneseq  ;;  %s7021_s1 = inlined_call_operand.vmem [shape: bf16[1024,512], index: 1, kind: input, shape index: {}]   ;;  %s7022_s0 = inlined_call_operand.vmem [shape: f32[2,1024], index: 0, kind: input, shape index: {}]   ;;  %s7023_s3 = inlined_call_operand.vmem [shape: bf16[512,256], index: 3, kind: input, shape index: {}]   ;;  %s7024_s2 = inlined_call_operand.vmem [shape: f32[1,512], index: 2, kind: input, shape index: {}]   ;;  %s7025_s5 = inlined_call_operand.vmem [shape: bf16[256,256], index: 5, kind: input, shape index: {}]   ;;  %s7026_s7 = inlined_call_operand.vmem [shape: bf16[256,1280], index: 7, kind: input, shape index: {}]   ;;  %s7027_s4 = inlined_call_operand.vmem [shape: f32[1,256], index: 4, kind: input, shape index: {}]   ;;  %s7028_s6 = inlined_call_operand.vmem [shape: f32[1,256], index: 6, kind: input, shape index: {}]   ;;  %s7029_s8 = inlined_call_operand.vmem [shape: f32[1,1280], index: 8, kind: input, shape index: {}]   ;;  %s7030_s9 = inlined_call_operand.vmem [shape: f32[2,1280], index: 9, kind: output, shape index: {}]  }
   0x1   :  { %v4506_v0 = vld [vmem:[%s7021_s1 + $0xe4] ss:$16 sps:$4 sm:$0xff]   ;;  %v4510_v2 = vld [vmem:[%s7021_s1 + $0xe0] ss:$16 sps:$4 sm:$0xff]   ;;  %v38_v37 = vunpack.c.l.s4 %v5276_v36 }
   0x2   :  { %v4508_v1 = vld [vmem:[%s7021_s1 + $0x2e4] ss:$16 sps:$4 sm:$0xff]   ;;  %1644 = vmatprep.subr.bf16.mxu0 %v4506_v0  ;;  %v4511_v3 = vld [vmem:[%s7021_s1 + $0x2e0] ss:$16 sps:$4 sm:$0xff]   ;;  %v5444_v43 = vshrl.u32 %v40_v38, 7 }
   0x3   :  { %1685 = vmatprep.subr.bf16.mxu1 %v4508_v1  ;;  %v4512_v4 = vld [vmem:[%s7021_s1 + $0xc4] ss:$16 sps:$4 sm:$0xff]   ;;  %1645 = vmatpush1.bf16.msra.mxu0 %v4510_v2  ;;  %v4516_v6 = vld [vmem:[%s7021_s1 + $0xc0] ss:$16 sps:$4 sm:$0xff]   ;;  %v39_v42 = vunpack.c.0.s8 %v38_v37 }
   0x4   :  { %1686 = vmatpush1.bf16.msra.mxu1 %v4511_v3  ;;  %v4514_v5 = vld [vmem:[%s7021_s1 + $0x2c4] ss:$16 sps:$4 sm:$0xff]   ;;  %1646 = vmatprep.subr.bf16.mxu0 %v4512_v4  ;;  %v4517_v7 = vld [vmem:[%s7021_s1 + $0x2c0] ss:$16 sps:$4 sm:$0xff]   ;;  %v33_v4 = vld [vmem:[%s7022_s0 + $0x8] sm:$0xff] }
   0x5   :  { %1687 = vmatprep.subr.bf16.mxu1 %v4514_v5  ;;  %v4518_v8 = vld [vmem:[%s7021_s1 + $0xa4] ss:$16 sps:$4 sm:$0xff]   ;;  %v4522_v10 = vld [vmem:[%s7021_s1 + $0xa0] ss:$16 sps:$4 sm:$0xff]   ;;  %v5462_v49 = vsub.s32 %v39_v42, %v5444_v43 }
   0x6   :  { %v4520_v9 = vld [vmem:[%s7021_s1 + $0x2a4] ss:$16 sps:$4 sm:$0xff]   ;;  %v4523_v11 = vld [vmem:[%s7021_s1 + $0x2a0] ss:$16 sps:$4 sm:$0xff]  }
   0x7   :  { %1647 = vmatpush1.bf16.msra.mxu0 %v4516_v6  ;;  %v4524_v12 = vld [vmem:[%s7021_s1 + $0x84] ss:$16 sps:$4 sm:$0xff]   ;;  %v4528_v14 = vld [vmem:[%s7021_s1 + $0x80] ss:$16 sps:$4 sm:$0xff]  }
   0x8   :  { %1688 = vmatpush1.bf16.msra.mxu1 %v4517_v7  ;;  %1648 = vmatprep.subr.bf16.mxu0 %v4518_v8  ;;  %v4526_v13 = vld [vmem:[%s7021_s1 + $0x284] ss:$16 sps:$4 sm:$0xff]   ;;  %v4529_v15 = vld [vmem:[%s7021_s1 + $0x280] ss:$16 sps:$4 sm:$0xff]  }
   0x9   :  { %1689 = vmatprep.subr.bf16.mxu1 %v4520_v9  ;;  %v4530_v16 = vld [vmem:[%s7021_s1 + $0x64] ss:$16 sps:$4 sm:$0xff]   ;;  %v4534_v18 = vld [vmem:[%s7021_s1 + $0x60] ss:$16 sps:$4 sm:$0xff]   ;;  %v53_v9 = vcombine.high %v33_v4, %v33_v4 }
   0xa   :  { %v4532_v17 = vld [vmem:[%s7021_s1 + $0x264] ss:$16 sps:$4 sm:$0xff]   ;;  %v4535_v19 = vld [vmem:[%s7021_s1 + $0x260] ss:$16 sps:$4 sm:$0xff]  }
   0xb   :  { %1649 = vmatpush1.bf16.msra.mxu0 %v4522_v10  ;;  %v4536_v20 = vld [vmem:[%s7021_s1 + $0x44] ss:$16 sps:$4 sm:$0xff]   ;;  %v4540_v22 = vld [vmem:[%s7021_s1 + $0x40] ss:$16 sps:$4 sm:$0xff]  }
   0xc   :  { %1690 = vmatpush1.bf16.msra.mxu1 %v4523_v11  ;;  %1650 = vmatprep.subr.bf16.mxu0 %v4524_v12  ;;  %v4538_v21 = vld [vmem:[%s7021_s1 + $0x244] ss:$16 sps:$4 sm:$0xff]   ;;  %v4541_v23 = vld [vmem:[%s7021_s1 + $0x240] ss:$16 sps:$4 sm:$0xff]  }
   0xd   :  { %1691 = vmatprep.subr.bf16.mxu1 %v4526_v13  ;;  %v4542_v24 = vld [vmem:[%s7021_s1 + $0x24] ss:$16 sps:$4 sm:$0xff]   ;;  %v4546_v26 = vld [vmem:[%s7021_s1 + $0x20] ss:$16 sps:$4 sm:$0xff]  }
   0xe   :  { %v4544_v25 = vld [vmem:[%s7021_s1 + $0x224] ss:$16 sps:$4 sm:$0xff]   ;;  %v4547_v27 = vld [vmem:[%s7021_s1 + $0x220] ss:$16 sps:$4 sm:$0xff]  }
   0xf   :  { %1651 = vmatpush1.bf16.msra.mxu0 %v4528_v14  ;;  %v4548_v28 = vld [vmem:[%s7021_s1 + $0x4] ss:$16 sps:$4 sm:$0xff]   ;;  %v4552_v30 = vld [vmem:[%s7021_s1] ss:$16 sps:$4 sm:$0xff]   ;;  %v5533_v14 = vrot.slane %v33_v4, %v5462_v49 }
  0x10   :  { %1692 = vmatpush1.bf16.msra.mxu1 %v4529_v15  ;;  %1652 = vmatprep.subr.bf16.mxu0 %v4530_v16  ;;  %v4550_v29 = vld [vmem:[%s7021_s1 + $0x204] ss:$16 sps:$4 sm:$0xff]   ;;  %v4553_v31 = vld [vmem:[%s7021_s1 + $0x200] ss:$16 sps:$4 sm:$0xff]   ;;  %v5536_v15 = vrot.slane %v53_v9, %v5462_v49 }
  0x11   :  { %1693 = vmatprep.subr.bf16.mxu1 %v4532_v17  ;;  %v4554_v32 = vld [vmem:[%s7021_s1 + $0x1e4] ss:$16 sps:$4 sm:$0xff]   ;;  %v4558_v34 = vld [vmem:[%s7021_s1 + $0x1e0] ss:$16 sps:$4 sm:$0xff]  }
  0x12   :  { %v4556_v33 = vld [vmem:[%s7021_s1 + $0x3e4] ss:$16 sps:$4 sm:$0xff]   ;;  %v4559_v35 = vld [vmem:[%s7021_s1 + $0x3e0] ss:$16 sps:$4 sm:$0xff]  }
  0x13   :  { %1653 = vmatpush1.bf16.msra.mxu0 %v4534_v18  ;;  %v4560_v39 = vld [vmem:[%s7021_s1 + $0x1c4] ss:$16 sps:$4 sm:$0xff]   ;;  %v4564_v41 = vld [vmem:[%s7021_s1 + $0x1c0] ss:$16 sps:$4 sm:$0xff]  }
  0x14   :  { %1694 = vmatpush1.bf16.msra.mxu1 %v4535_v19  ;;  %1654 = vmatprep.subr.bf16.mxu0 %v4536_v20  ;;  %v4562_v40 = vld [vmem:[%s7021_s1 + $0x3c4] ss:$16 sps:$4 sm:$0xff]   ;;  %v4565_v44 = vld [vmem:[%s7021_s1 + $0x3c0] ss:$16 sps:$4 sm:$0xff]   ;;  %v68_v20 = vcombine.high %v5533_v14, %v5533_v14 }
  0x15   :  { %1695 = vmatprep.subr.bf16.mxu1 %v4538_v21  ;;  %v4566_v45 = vld [vmem:[%s7021_s1 + $0x1a4] ss:$16 sps:$4 sm:$0xff]   ;;  %v4570_v47 = vld [vmem:[%s7021_s1 + $0x1a0] ss:$16 sps:$4 sm:$0xff]   ;;  %v69_v21 = vcombine.high %v5536_v15, %v5536_v15 }
  0x16   :  { %v4568_v46 = vld [vmem:[%s7021_s1 + $0x3a4] ss:$16 sps:$4 sm:$0xff]   ;;  %v4571_v48 = vld [vmem:[%s7021_s1 + $0x3a0] ss:$16 sps:$4 sm:$0xff]  }
  0x17   :  { %1655 = vmatpush1.bf16.msra.mxu0 %v4540_v22  ;;  %v4572_v50 = vld [vmem:[%s7021_s1 + $0x184] ss:$16 sps:$4 sm:$0xff]   ;;  %v4576_v55 = vld [vmem:[%s7021_s1 + $0x180] ss:$16 sps:$4 sm:$0xff]  }
  0x18   :  { %1696 = vmatpush1.bf16.msra.mxu1 %v4541_v23  ;;  %1656 = vmatprep.subr.bf16.mxu0 %v4542_v24  ;;  %v4574_v51 = vld [vmem:[%s7021_s1 + $0x384] ss:$16 sps:$4 sm:$0xff]   ;;  %v4577_v56 = vld [vmem:[%s7021_s1 + $0x380] ss:$16 sps:$4 sm:$0xff]  }
  0x19   :  { %1697 = vmatprep.subr.bf16.mxu1 %v4544_v25  ;;  %v32_v52 = vld [vmem:[%s7022_s0] sm:$0xff] }
  0x1a   :  { %v43_v53 = vrot.slane %v32_v52, %v5462_v49  ;;  %v36_v54 = vcombine.high %v32_v52, %v32_v52  ;;  %v4578_v57 = vld [vmem:[%s7021_s1 + $0x164] ss:$16 sps:$4 sm:$0xff]   ;;  %v4582_v63 = vld [vmem:[%s7021_s1 + $0x160] ss:$16 sps:$4 sm:$0xff]  }
  0x1b   :  { %1657 = vmatpush1.bf16.msra.mxu0 %v4546_v26  ;;  %v4580_v58 = vld [vmem:[%s7021_s1 + $0x364] ss:$16 sps:$4 sm:$0xff]   ;;  %v4583_v0 = vld [vmem:[%s7021_s1 + $0x360] ss:$16 sps:$4 sm:$0xff]  }
  0x1c   :  { %1698 = vmatpush1.bf16.msra.mxu1 %v4547_v27  ;;  %1658 = vmatprep.subr.bf16.mxu0 %v4548_v28  ;;  %v51_v59 = vcombine.high %v43_v53, %v43_v53  ;;  %v50_v60 = vrot.slane %v36_v54, %v5462_v49  ;;  %v4584_v1 = vld [vmem:[%s7021_s1 + $0x144] ss:$16 sps:$4 sm:$0xff]   ;;  %v4588_v5 = vld [vmem:[%s7021_s1 + $0x140] ss:$16 sps:$4 sm:$0xff]   ;;  %v5554_v22 = vpack.c.bf16 %v43_v53, %v43_v53 }
  0x1d   :  { %1699 = vmatprep.subr.bf16.mxu1 %v4550_v29  ;;  %v4586_v2 = vld [vmem:[%s7021_s1 + $0x344] ss:$16 sps:$4 sm:$0xff]   ;;  %v4589_v6 = vld [vmem:[%s7021_s1 + $0x340] ss:$16 sps:$4 sm:$0xff]   ;;  %v5570_v28 = vpack.c.bf16 %v68_v20, %v68_v20  ;;  %v5572_v29 = vpack.c.bf16 %v69_v21, %v69_v21 }
  0x1e   :  { %v5487_v61 = vpack.c.bf16 %v51_v59, %v51_v59  ;;  %v52_v62 = vcombine.high %v50_v60, %v50_v60  ;;  %v4590_v7 = vld [vmem:[%s7021_s1 + $0x124] ss:$16 sps:$4 sm:$0xff]   ;;  %v4594_v10 = vld [vmem:[%s7021_s1 + $0x120] ss:$16 sps:$4 sm:$0xff]   ;;  %v5556_v23 = vpack.c.bf16 %v50_v60, %v50_v60 }
  0x1f   :  { %1659 = vmatpush1.bf16.msra.mxu0 %v4552_v30  ;;  %v4592_v8 = vld [vmem:[%s7021_s1 + $0x324] ss:$16 sps:$4 sm:$0xff]   ;;  %v4595_v11 = vld [vmem:[%s7021_s1 + $0x320] ss:$16 sps:$4 sm:$0xff]  }
  0x20   :  { %1700 = vmatpush1.bf16.msra.mxu1 %v4553_v31  ;;  %1660 = vmatprep.subr.bf16.mxu0 %v4554_v32  ;;  %v5501_v3 = vpack.c.bf16 %v52_v62, %v52_v62  ;;  %v4596_v12 = vld [vmem:[%s7021_s1 + $0x104] ss:$16 sps:$4 sm:$0xff]   ;;  %v4600_v16 = vld [vmem:[%s7021_s1 + $0x100] ss:$16 sps:$4 sm:$0xff]  }
  0x21   :  { %1701 = vmatprep.subr.bf16.mxu1 %v4556_v33  ;;  %1676 = vmatprep.mubr.bf16.mxu0 %v5487_v61  ;;  %v4598_v13 = vld [vmem:[%s7021_s1 + $0x304] ss:$16 sps:$4 sm:$0xff]   ;;  %v4601_v17 = vld [vmem:[%s7021_s1 + $0x300] ss:$16 sps:$4 sm:$0xff]  }
  0x22   :  { %1717 = vmatprep.mubr.bf16.mxu1 %v5501_v3  ;;  %v4606_v18 = vld [vmem:[%s7021_s1 + $0x4e4] ss:$16 sps:$4 sm:$0xff]   ;;  %v4604_v24 = vld [vmem:[%s7021_s1 + $0x4e0] ss:$16 sps:$4 sm:$0xff]  }
  0x23   :  { %1661 = vmatpush2.bf16.msra.mxu0 %v4558_v34  ;;  %v4609_v19 = vld [vmem:[%s7021_s1 + $0x6e4] ss:$16 sps:$4 sm:$0xff]   ;;  %v4607_v25 = vld [vmem:[%s7021_s1 + $0x6e0] ss:$16 sps:$4 sm:$0xff]  }
  0x24   :  { %1702 = vmatpush2.bf16.msra.mxu1 %v4559_v35  ;;  %1662 = vmatprep.subr.bf16.mxu0 %v4560_v39  ;;  %v4612_v26 = vld [vmem:[%s7021_s1 + $0x4c4] ss:$16 sps:$4 sm:$0xff]   ;;  %v4610_v30 = vld [vmem:[%s7021_s1 + $0x4c0] ss:$16 sps:$4 sm:$0xff]  }
  0x25   :  { %1703 = vmatprep.subr.bf16.mxu1 %v4562_v40  ;;  %v4615_v27 = vld [vmem:[%s7021_s1 + $0x6c4] ss:$16 sps:$4 sm:$0xff]   ;;  %v4613_v31 = vld [vmem:[%s7021_s1 + $0x6c0] ss:$16 sps:$4 sm:$0xff]  }
  0x26   :  { %v4618_v32 = vld [vmem:[%s7021_s1 + $0x4a4] ss:$16 sps:$4 sm:$0xff]   ;;  %v4616_v34 = vld [vmem:[%s7021_s1 + $0x4a0] ss:$16 sps:$4 sm:$0xff]  }
  0x27   :  { %1663 = vmatpush2.bf16.msra.mxu0 %v4564_v41  ;;  %v4621_v33 = vld [vmem:[%s7021_s1 + $0x6a4] ss:$16 sps:$4 sm:$0xff]   ;;  %v4619_v35 = vld [vmem:[%s7021_s1 + $0x6a0] ss:$16 sps:$4 sm:$0xff]  }
  0x28   :  { %1704 = vmatpush2.bf16.msra.mxu1 %v4565_v44  ;;  %1664 = vmatprep.subr.bf16.mxu0 %v4566_v45  ;;  %v4624_v36 = vld [vmem:[%s7021_s1 + $0x484] ss:$16 sps:$4 sm:$0xff]   ;;  %v4622_v38 = vld [vmem:[%s7021_s1 + $0x480] ss:$16 sps:$4 sm:$0xff]  }
  0x29   :  { %1705 = vmatprep.subr.bf16.mxu1 %v4568_v46  ;;  %v4627_v37 = vld [vmem:[%s7021_s1 + $0x684] ss:$16 sps:$4 sm:$0xff]   ;;  %v4625_v39 = vld [vmem:[%s7021_s1 + $0x680] ss:$16 sps:$4 sm:$0xff]  }
  0x2a   :  { %v4630_v40 = vld [vmem:[%s7021_s1 + $0x464] ss:$16 sps:$4 sm:$0xff]   ;;  %v4628_v42 = vld [vmem:[%s7021_s1 + $0x460] ss:$16 sps:$4 sm:$0xff]  }
  0x2b   :  { %1665 = vmatpush2.bf16.msra.mxu0 %v4570_v47  ;;  %v4633_v41 = vld [vmem:[%s7021_s1 + $0x664] ss:$16 sps:$4 sm:$0xff]   ;;  %v4631_v44 = vld [vmem:[%s7021_s1 + $0x660] ss:$16 sps:$4 sm:$0xff]  }
  0x2c   :  { %1706 = vmatpush2.bf16.msra.mxu1 %v4571_v48  ;;  %1666 = vmatprep.subr.bf16.mxu0 %v4572_v50  ;;  %v4636_v45 = vld [vmem:[%s7021_s1 + $0x444] ss:$16 sps:$4 sm:$0xff]   ;;  %v4634_v47 = vld [vmem:[%s7021_s1 + $0x440] ss:$16 sps:$4 sm:$0xff]  }
  0x2d   :  { %1707 = vmatprep.subr.bf16.mxu1 %v4574_v51  ;;  %v4639_v46 = vld [vmem:[%s7021_s1 + $0x644] ss:$16 sps:$4 sm:$0xff]   ;;  %v4637_v48 = vld [vmem:[%s7021_s1 + $0x640] ss:$16 sps:$4 sm:$0xff]  }
  0x2e   :  { %v4642_v50 = vld [vmem:[%s7021_s1 + $0x424] ss:$16 sps:$4 sm:$0xff]   ;;  %v4640_v52 = vld [vmem:[%s7021_s1 + $0x420] ss:$16 sps:$4 sm:$0xff]  }
  0x2f   :  { %1667 = vmatpush2.bf16.msra.mxu0 %v4576_v55  ;;  %v4645_v51 = vld [vmem:[%s7021_s1 + $0x624] ss:$16 sps:$4 sm:$0xff]   ;;  %v4643_v53 = vld [vmem:[%s7021_s1 + $0x620] ss:$16 sps:$4 sm:$0xff]  }
  0x30   :  { %1708 = vmatpush2.bf16.msra.mxu1 %v4577_v56  ;;  %1668 = vmatprep.subr.bf16.mxu0 %v4578_v57  ;;  %v4648_v54 = vld [vmem:[%s7021_s1 + $0x404] ss:$16 sps:$4 sm:$0xff]   ;;  %v4646_v56 = vld [vmem:[%s7021_s1 + $0x400] ss:$16 sps:$4 sm:$0xff]  }
  0x31   :  { %1709 = vmatprep.subr.bf16.mxu1 %v4580_v58  ;;  %v4651_v55 = vld [vmem:[%s7021_s1 + $0x604] ss:$16 sps:$4 sm:$0xff]   ;;  %v4649_v57 = vld [vmem:[%s7021_s1 + $0x600] ss:$16 sps:$4 sm:$0xff]  }
  0x32   :  { %v4654_v58 = vld [vmem:[%s7021_s1 + $0x5e4] ss:$16 sps:$4 sm:$0xff]   ;;  %v4652_v60 = vld [vmem:[%s7021_s1 + $0x5e0] ss:$16 sps:$4 sm:$0xff]  }
  0x33   :  { %1669 = vmatpush2.bf16.msra.mxu0 %v4582_v63  ;;  %v4657_v59 = vld [vmem:[%s7021_s1 + $0x7e4] ss:$16 sps:$4 sm:$0xff]   ;;  %v4655_v62 = vld [vmem:[%s7021_s1 + $0x7e0] ss:$16 sps:$4 sm:$0xff]  }
  0x34   :  { %1710 = vmatpush2.bf16.msra.mxu1 %v4583_v0  ;;  %1670 = vmatprep.subr.bf16.mxu0 %v4584_v1  ;;  %v4660_v63 = vld [vmem:[%s7021_s1 + $0x5c4] ss:$16 sps:$4 sm:$0xff]   ;;  %v4658_v1 = vld [vmem:[%s7021_s1 + $0x5c0] ss:$16 sps:$4 sm:$0xff]  }
  0x35   :  { %1711 = vmatprep.subr.bf16.mxu1 %v4586_v2  ;;  %v4663_v0 = vld [vmem:[%s7021_s1 + $0x7c4] ss:$16 sps:$4 sm:$0xff]   ;;  %v4661_v2 = vld [vmem:[%s7021_s1 + $0x7c0] ss:$16 sps:$4 sm:$0xff]  }
  0x36   :  { %v4666_v4 = vld [vmem:[%s7021_s1 + $0x5a4] ss:$16 sps:$4 sm:$0xff]   ;;  %v4682_v20 = vld [vmem:[%s7021_s1 + $0x540] ss:$16 sps:$4 sm:$0xff]  }
  0x37   :  { %1671 = vmatpush2.bf16.msra.mxu0 %v4588_v5  ;;  %v4669_v5 = vld [vmem:[%s7021_s1 + $0x7a4] ss:$16 sps:$4 sm:$0xff]   ;;  %v4685_v21 = vld [vmem:[%s7021_s1 + $0x740] ss:$16 sps:$4 sm:$0xff]  }
  0x38   :  { %1712 = vmatpush2.bf16.msra.mxu1 %v4589_v6  ;;  %1672 = vmatprep.subr.bf16.mxu0 %v4590_v7  ;;  %v4664_v6 = vld [vmem:[%s7021_s1 + $0x5a0] ss:$16 sps:$4 sm:$0xff]   ;;  %v4675_v9 = vld [vmem:[%s7021_s1 + $0x784] ss:$16 sps:$4 sm:$0xff]  }
  0x39   :  { %1713 = vmatprep.subr.bf16.mxu1 %v4592_v8  ;;  %v4667_v7 = vld [vmem:[%s7021_s1 + $0x7a0] ss:$16 sps:$4 sm:$0xff]   ;;  %v4672_v8 = vld [vmem:[%s7021_s1 + $0x584] ss:$16 sps:$4 sm:$0xff]  }
  0x3b   :  { %1673 = vmatpush2.bf16.msra.mxu0 %v4594_v10  ;;  %v4670_v10 = vld [vmem:[%s7021_s1 + $0x580] ss:$16 sps:$4 sm:$0xff]  }
  0x3c   :  { %1714 = vmatpush2.bf16.msra.mxu1 %v4595_v11  ;;  %1674 = vmatprep.subr.bf16.mxu0 %v4596_v12  ;;  %v4673_v11 = vld [vmem:[%s7021_s1 + $0x780] ss:$16 sps:$4 sm:$0xff]   ;;  %v4678_v12 = vld [vmem:[%s7021_s1 + $0x564] ss:$16 sps:$4 sm:$0xff]  }
  0x3d   :  { %1715 = vmatprep.subr.bf16.mxu1 %v4598_v13  ;;  %v4681_v13 = vld [vmem:[%s7021_s1 + $0x764] ss:$16 sps:$4 sm:$0xff]  }
  0x3f   :  { %1675 = vmatpush2.bf16.msra.mxu0 %v4600_v16  ;;  %v4676_v16 = vld [vmem:[%s7021_s1 + $0x560] ss:$16 sps:$4 sm:$0xff]  }
  0x40   :  { %1716 = vmatpush2.bf16.msra.mxu1 %v4601_v17  ;;  %1726 = vmatprep.subr.bf16.mxu0 %v4606_v18  ;;  %v4679_v17 = vld [vmem:[%s7021_s1 + $0x760] ss:$16 sps:$4 sm:$0xff]   ;;  %v4684_v18 = vld [vmem:[%s7021_s1 + $0x544] ss:$16 sps:$4 sm:$0xff]  }
  0x41   :  { %1767 = vmatprep.subr.bf16.mxu1 %v4609_v19  ;;  %v4687_v19 = vld [vmem:[%s7021_s1 + $0x744] ss:$16 sps:$4 sm:$0xff]  }
  0x42   :  { %1677 = vmatmul.mubr.bf16.vlgmr.msra.gmra.mxu0 %v5554_v22 }
  0x43   :  { %1718 = vmatmul.mubr.bf16.vlgmr.msra.gmra.mxu1 %v5556_v23  ;;  %1727 = vmatpush1.bf16.msra.mxu0 %v4604_v24  ;;  %v4690_v24 = vld [vmem:[%s7021_s1 + $0x524] ss:$16 sps:$4 sm:$0xff]  }
  0x44   :  { %1768 = vmatpush1.bf16.msra.mxu1 %v4607_v25  ;;  %1728 = vmatprep.subr.bf16.mxu0 %v4612_v26  ;;  %v4693_v25 = vld [vmem:[%s7021_s1 + $0x724] ss:$16 sps:$4 sm:$0xff]   ;;  %v4688_v26 = vld [vmem:[%s7021_s1 + $0x520] ss:$16 sps:$4 sm:$0xff]  }
  0x45   :  { %1769 = vmatprep.subr.bf16.mxu1 %v4615_v27  ;;  %1758 = vmatprep.mubr.bf16.mxu0 %v5570_v28  ;;  %v4691_v27 = vld [vmem:[%s7021_s1 + $0x720] ss:$16 sps:$4 sm:$0xff]  }
  0x46   :  { %1799 = vmatprep.mubr.bf16.mxu1 %v5572_v29 }
  0x47   :  { %1729 = vmatpush1.bf16.msra.mxu0 %v4610_v30  ;;  %v4696_v30 = vld [vmem:[%s7021_s1 + $0x504] ss:$16 sps:$4 sm:$0xff]  }
  0x48   :  { %1770 = vmatpush1.bf16.msra.mxu1 %v4613_v31  ;;  %1730 = vmatprep.subr.bf16.mxu0 %v4618_v32  ;;  %v4699_v31 = vld [vmem:[%s7021_s1 + $0x704] ss:$16 sps:$4 sm:$0xff]   ;;  %v4694_v32 = vld [vmem:[%s7021_s1 + $0x500] ss:$16 sps:$4 sm:$0xff]  }
  0x49   :  { %1771 = vmatprep.subr.bf16.mxu1 %v4621_v33  ;;  %v4697_v33 = vld [vmem:[%s7021_s1 + $0x700] ss:$16 sps:$4 sm:$0xff]  }
  0x4b   :  { %1731 = vmatpush1.bf16.msra.mxu0 %v4616_v34  ;;  %v4702_v34 = vld [vmem:[%s7021_s1 + $0xec] ss:$16 sps:$4 sm:$0xff]  }
  0x4c   :  { %1772 = vmatpush1.bf16.msra.mxu1 %v4619_v35  ;;  %1732 = vmatprep.subr.bf16.mxu0 %v4624_v36  ;;  %v4705_v35 = vld [vmem:[%s7021_s1 + $0x2ec] ss:$16 sps:$4 sm:$0xff]   ;;  %v5760_v36 = vpack.c.bf16 %v5533_v14, %v5533_v14 }
  0x4d   :  { %1773 = vmatprep.subr.bf16.mxu1 %v4627_v37  ;;  %v5764_v37 = vpack.c.bf16 %v5536_v15, %v5536_v15  ;;  %v4708_v14 = vld [vmem:[%s7021_s1 + $0xcc] ss:$16 sps:$4 sm:$0xff]  }
  0x4e   :  { %v4711_v15 = vld [vmem:[%s7021_s1 + $0x2cc] ss:$16 sps:$4 sm:$0xff]  }
  0x4f   :  { %1733 = vmatpush1.bf16.msra.mxu0 %v4622_v38  ;;  %v4700_v38 = vld [vmem:[%s7021_s1 + $0xe8] ss:$16 sps:$4 sm:$0xff]  }
  0x50   :  { %1774 = vmatpush1.bf16.msra.mxu1 %v4625_v39  ;;  %1734 = vmatprep.subr.bf16.mxu0 %v4630_v40  ;;  %v4703_v39 = vld [vmem:[%s7021_s1 + $0x2e8] ss:$16 sps:$4 sm:$0xff]  }
  0x51   :  { %1775 = vmatprep.subr.bf16.mxu1 %v4633_v41  ;;  %v4706_v40 = vld [vmem:[%s7021_s1 + $0xc8] ss:$16 sps:$4 sm:$0xff]  }
  0x52   :  { %v4709_v41 = vld [vmem:[%s7021_s1 + $0x2c8] ss:$16 sps:$4 sm:$0xff]  }
  0x53   :  { %1735 = vmatpush1.bf16.msra.mxu0 %v4628_v42  ;;  %v4714_v42 = vld [vmem:[%s7021_s1 + $0xac] ss:$16 sps:$4 sm:$0xff]  }
  0x54   :  { %1776 = vmatpush1.bf16.msra.mxu1 %v4631_v44  ;;  %1736 = vmatprep.subr.bf16.mxu0 %v4636_v45  ;;  %v4717_v44 = vld [vmem:[%s7021_s1 + $0x2ac] ss:$16 sps:$4 sm:$0xff]   ;;  %v4712_v45 = vld [vmem:[%s7021_s1 + $0xa8] ss:$16 sps:$4 sm:$0xff]  }
  0x55   :  { %1777 = vmatprep.subr.bf16.mxu1 %v4639_v46  ;;  %v4715_v46 = vld [vmem:[%s7021_s1 + $0x2a8] ss:$16 sps:$4 sm:$0xff]  }
  0x57   :  { %1737 = vmatpush1.bf16.msra.mxu0 %v4634_v47  ;;  %v4720_v47 = vld [vmem:[%s7021_s1 + $0x8c] ss:$16 sps:$4 sm:$0xff]  }
  0x58   :  { %1778 = vmatpush1.bf16.msra.mxu1 %v4637_v48  ;;  %1738 = vmatprep.subr.bf16.mxu0 %v4642_v50  ;;  %v4721_v48 = vld [vmem:[%s7021_s1 + $0x288] ss:$16 sps:$4 sm:$0xff]   ;;  %v4726_v50 = vld [vmem:[%s7021_s1 + $0x6c] ss:$16 sps:$4 sm:$0xff]  }
  0x59   :  { %1779 = vmatprep.subr.bf16.mxu1 %v4645_v51  ;;  %v4729_v51 = vld [vmem:[%s7021_s1 + $0x26c] ss:$16 sps:$4 sm:$0xff]  }
  0x5b   :  { %1739 = vmatpush1.bf16.msra.mxu0 %v4640_v52  ;;  %v4724_v52 = vld [vmem:[%s7021_s1 + $0x68] ss:$16 sps:$4 sm:$0xff]  }
  0x5c   :  { %1780 = vmatpush1.bf16.msra.mxu1 %v4643_v53  ;;  %1740 = vmatprep.subr.bf16.mxu0 %v4648_v54  ;;  %v4727_v53 = vld [vmem:[%s7021_s1 + $0x268] ss:$16 sps:$4 sm:$0xff]   ;;  %v4732_v54 = vld [vmem:[%s7021_s1 + $0x4c] ss:$16 sps:$4 sm:$0xff]  }
  0x5d   :  { %1781 = vmatprep.subr.bf16.mxu1 %v4651_v55  ;;  %v4735_v55 = vld [vmem:[%s7021_s1 + $0x24c] ss:$16 sps:$4 sm:$0xff]  }
  0x5f   :  { %1741 = vmatpush1.bf16.msra.mxu0 %v4646_v56  ;;  %v4730_v56 = vld [vmem:[%s7021_s1 + $0x48] ss:$16 sps:$4 sm:$0xff]  }
  0x60   :  { %1782 = vmatpush1.bf16.msra.mxu1 %v4649_v57  ;;  %1742 = vmatprep.subr.bf16.mxu0 %v4654_v58  ;;  %v4733_v57 = vld [vmem:[%s7021_s1 + $0x248] ss:$16 sps:$4 sm:$0xff]   ;;  %v4738_v58 = vld [vmem:[%s7021_s1 + $0x2c] ss:$16 sps:$4 sm:$0xff]  }
  0x61   :  { %1783 = vmatprep.subr.bf16.mxu1 %v4657_v59  ;;  %v4741_v59 = vld [vmem:[%s7021_s1 + $0x22c] ss:$16 sps:$4 sm:$0xff]  }
  0x63   :  { %1743 = vmatpush2.bf16.msra.mxu0 %v4652_v60  ;;  %v4736_v60 = vld [vmem:[%s7021_s1 + $0x28] ss:$16 sps:$4 sm:$0xff]  }
  0x64   :  { %1784 = vmatpush2.bf16.msra.mxu1 %v4655_v62  ;;  %1744 = vmatprep.subr.bf16.mxu0 %v4660_v63  ;;  %v4739_v62 = vld [vmem:[%s7021_s1 + $0x228] ss:$16 sps:$4 sm:$0xff]   ;;  %v4744_v63 = vld [vmem:[%s7021_s1 + $0xc] ss:$16 sps:$4 sm:$0xff]  }
  0x65   :  { %1785 = vmatprep.subr.bf16.mxu1 %v4663_v0  ;;  %v4747_v0 = vld [vmem:[%s7021_s1 + $0x20c] ss:$16 sps:$4 sm:$0xff]  }
  0x67   :  { %1745 = vmatpush2.bf16.msra.mxu0 %v4658_v1  ;;  %v4742_v1 = vld [vmem:[%s7021_s1 + $0x8] ss:$16 sps:$4 sm:$0xff]  }
  0x68   :  { %1786 = vmatpush2.bf16.msra.mxu1 %v4661_v2  ;;  %1746 = vmatprep.subr.bf16.mxu0 %v4666_v4  ;;  %v4745_v2 = vld [vmem:[%s7021_s1 + $0x208] ss:$16 sps:$4 sm:$0xff]   ;;  %v4750_v4 = vld [vmem:[%s7021_s1 + $0x1ec] ss:$16 sps:$4 sm:$0xff]  }
  0x69   :  { %1787 = vmatprep.subr.bf16.mxu1 %v4669_v5  ;;  %v4753_v5 = vld [vmem:[%s7021_s1 + $0x3ec] ss:$16 sps:$4 sm:$0xff]  }
  0x6b   :  { %1747 = vmatpush2.bf16.msra.mxu0 %v4664_v6  ;;  %v4748_v6 = vld [vmem:[%s7021_s1 + $0x1e8] ss:$16 sps:$4 sm:$0xff]  }
  0x6c   :  { %1788 = vmatpush2.bf16.msra.mxu1 %v4667_v7  ;;  %1748 = vmatprep.subr.bf16.mxu0 %v4672_v8  ;;  %v4751_v7 = vld [vmem:[%s7021_s1 + $0x3e8] ss:$16 sps:$4 sm:$0xff]   ;;  %v4756_v8 = vld [vmem:[%s7021_s1 + $0x1cc] ss:$16 sps:$4 sm:$0xff]  }
  0x6d   :  { %1789 = vmatprep.subr.bf16.mxu1 %v4675_v9  ;;  %v4759_v9 = vld [vmem:[%s7021_s1 + $0x3cc] ss:$16 sps:$4 sm:$0xff]  }
  0x6f   :  { %1749 = vmatpush2.bf16.msra.mxu0 %v4670_v10  ;;  %v4754_v10 = vld [vmem:[%s7021_s1 + $0x1c8] ss:$16 sps:$4 sm:$0xff]  }
  0x70   :  { %1790 = vmatpush2.bf16.msra.mxu1 %v4673_v11  ;;  %1750 = vmatprep.subr.bf16.mxu0 %v4678_v12  ;;  %v4757_v11 = vld [vmem:[%s7021_s1 + $0x3c8] ss:$16 sps:$4 sm:$0xff]   ;;  %v4762_v12 = vld [vmem:[%s7021_s1 + $0x1ac] ss:$16 sps:$4 sm:$0xff]  }
  0x71   :  { %1791 = vmatprep.subr.bf16.mxu1 %v4681_v13  ;;  %v4765_v13 = vld [vmem:[%s7021_s1 + $0x3ac] ss:$16 sps:$4 sm:$0xff]  }
  0x73   :  { %1751 = vmatpush2.bf16.msra.mxu0 %v4676_v16  ;;  %v4760_v16 = vld [vmem:[%s7021_s1 + $0x1a8] ss:$16 sps:$4 sm:$0xff]  }
  0x74   :  { %1792 = vmatpush2.bf16.msra.mxu1 %v4679_v17  ;;  %1752 = vmatprep.subr.bf16.mxu0 %v4684_v18  ;;  %v4763_v17 = vld [vmem:[%s7021_s1 + $0x3a8] ss:$16 sps:$4 sm:$0xff]   ;;  %v4768_v18 = vld [vmem:[%s7021_s1 + $0x18c] ss:$16 sps:$4 sm:$0xff]  }
  0x75   :  { %1793 = vmatprep.subr.bf16.mxu1 %v4687_v19  ;;  %v4771_v19 = vld [vmem:[%s7021_s1 + $0x38c] ss:$16 sps:$4 sm:$0xff]  }
  0x77   :  { %1753 = vmatpush2.bf16.msra.mxu0 %v4682_v20  ;;  %v4766_v20 = vld [vmem:[%s7021_s1 + $0x188] ss:$16 sps:$4 sm:$0xff]  }
  0x78   :  { %1794 = vmatpush2.bf16.msra.mxu1 %v4685_v21  ;;  %1754 = vmatprep.subr.bf16.mxu0 %v4690_v24  ;;  %v4769_v21 = vld [vmem:[%s7021_s1 + $0x388] ss:$16 sps:$4 sm:$0xff]   ;;  %v4774_v24 = vld [vmem:[%s7021_s1 + $0x16c] ss:$16 sps:$4 sm:$0xff]  }
  0x79   :  { %1795 = vmatprep.subr.bf16.mxu1 %v4693_v25  ;;  %v4777_v25 = vld [vmem:[%s7021_s1 + $0x36c] ss:$16 sps:$4 sm:$0xff]  }
  0x7b   :  { %1755 = vmatpush2.bf16.msra.mxu0 %v4688_v26  ;;  %v4772_v26 = vld [vmem:[%s7021_s1 + $0x168] ss:$16 sps:$4 sm:$0xff]  }
  0x7c   :  { %1796 = vmatpush2.bf16.msra.mxu1 %v4691_v27  ;;  %1756 = vmatprep.subr.bf16.mxu0 %v4696_v30  ;;  %v4775_v27 = vld [vmem:[%s7021_s1 + $0x368] ss:$16 sps:$4 sm:$0xff]   ;;  %v4780_v30 = vld [vmem:[%s7021_s1 + $0x14c] ss:$16 sps:$4 sm:$0xff]  }
  0x7d   :  { %1797 = vmatprep.subr.bf16.mxu1 %v4699_v31  ;;  %v4783_v31 = vld [vmem:[%s7021_s1 + $0x34c] ss:$16 sps:$4 sm:$0xff]  }
  0x7f   :  { %1757 = vmatpush2.bf16.msra.mxu0 %v4694_v32  ;;  %v4778_v32 = vld [vmem:[%s7021_s1 + $0x148] ss:$16 sps:$4 sm:$0xff]  }
  0x80   :  { %1798 = vmatpush2.bf16.msra.mxu1 %v4697_v33  ;;  %1808 = vmatprep.subr.bf16.mxu0 %v4702_v34  ;;  %v4781_v33 = vld [vmem:[%s7021_s1 + $0x348] ss:$16 sps:$4 sm:$0xff]   ;;  %v4786_v34 = vld [vmem:[%s7021_s1 + $0x12c] ss:$16 sps:$4 sm:$0xff]  }
  0x81   :  { %1849 = vmatprep.subr.bf16.mxu1 %v4705_v35  ;;  %v4789_v35 = vld [vmem:[%s7021_s1 + $0x32c] ss:$16 sps:$4 sm:$0xff]  }
  0x82   :  { %1759 = vmatmul.mubr.bf16.vlgmr.msra.gmra.mxu0 %v5760_v36 }
  0x83   :  { %1800 = vmatmul.mubr.bf16.vlgmr.msra.gmra.mxu1 %v5764_v37  ;;  %1809 = vmatpush1.bf16.msra.mxu0 %v4700_v38  ;;  %v4784_v38 = vld [vmem:[%s7021_s1 + $0x128] ss:$16 sps:$4 sm:$0xff]  }
  0x84   :  { %1850 = vmatpush1.bf16.msra.mxu1 %v4703_v39  ;;  %1810 = vmatprep.subr.bf16.mxu0 %v4708_v14  ;;  %v4787_v39 = vld [vmem:[%s7021_s1 + $0x328] ss:$16 sps:$4 sm:$0xff]   ;;  %v4792_v14 = vld [vmem:[%s7021_s1 + $0x10c] ss:$16 sps:$4 sm:$0xff]  }
  0x85   :  { %1851 = vmatprep.subr.bf16.mxu1 %v4711_v15  ;;  %1840 = vmatprep.mubr.bf16.mxu0 %v5487_v61  ;;  %v4723_v61 = vld [vmem:[%s7021_s1 + $0x28c] ss:$16 sps:$4 sm:$0xff]  }
  0x86   :  { %1881 = vmatprep.mubr.bf16.mxu1 %v5501_v3  ;;  %v4718_v3 = vld [vmem:[%s7021_s1 + $0x88] ss:$16 sps:$4 sm:$0xff]   ;;  %v4795_v15 = vld [vmem:[%s7021_s1 + $0x30c] ss:$16 sps:$4 sm:$0xff]  }
  0x87   :  { %1811 = vmatpush1.bf16.msra.mxu0 %v4706_v40  ;;  %v4790_v40 = vld [vmem:[%s7021_s1 + $0x108] ss:$16 sps:$4 sm:$0xff]  }
  0x88   :  { %1852 = vmatpush1.bf16.msra.mxu1 %v4709_v41  ;;  %1812 = vmatprep.subr.bf16.mxu0 %v4714_v42  ;;  %v4793_v41 = vld [vmem:[%s7021_s1 + $0x308] ss:$16 sps:$4 sm:$0xff]   ;;  %v4798_v42 = vld [vmem:[%s7021_s1 + $0x4ec] ss:$16 sps:$4 sm:$0xff]  }
  0x89   :  { %1853 = vmatprep.subr.bf16.mxu1 %v4717_v44  ;;  %v4801_v44 = vld [vmem:[%s7021_s1 + $0x6ec] ss:$16 sps:$4 sm:$0xff]  }
  0x8b   :  { %1813 = vmatpush1.bf16.msra.mxu0 %v4712_v45  ;;  %v4796_v45 = vld [vmem:[%s7021_s1 + $0x4e8] ss:$16 sps:$4 sm:$0xff]  }
  0x8c   :  { %1854 = vmatpush1.bf16.msra.mxu1 %v4715_v46  ;;  %1814 = vmatprep.subr.bf16.mxu0 %v4720_v47  ;;  %v4799_v46 = vld [vmem:[%s7021_s1 + $0x6e8] ss:$16 sps:$4 sm:$0xff]   ;;  %v4804_v47 = vld [vmem:[%s7021_s1 + $0x4cc] ss:$16 sps:$4 sm:$0xff]  }
  0x8d   :  { %1855 = vmatprep.subr.bf16.mxu1 %v4723_v61  ;;  %v4807_v61 = vld [vmem:[%s7021_s1 + $0x6cc] ss:$16 sps:$4 sm:$0xff]  }
  0x8f   :  { %1815 = vmatpush1.bf16.msra.mxu0 %v4718_v3  ;;  %v4802_v3 = vld [vmem:[%s7021_s1 + $0x4c8] ss:$16 sps:$4 sm:$0xff]  }
  0x90   :  { %1856 = vmatpush1.bf16.msra.mxu1 %v4721_v48  ;;  %1816 = vmatprep.subr.bf16.mxu0 %v4726_v50  ;;  %v4805_v48 = vld [vmem:[%s7021_s1 + $0x6c8] ss:$16 sps:$4 sm:$0xff]   ;;  %v4810_v50 = vld [vmem:[%s7021_s1 + $0x4ac] ss:$16 sps:$4 sm:$0xff]  }
  0x91   :  { %1857 = vmatprep.subr.bf16.mxu1 %v4729_v51  ;;  %v4813_v51 = vld [vmem:[%s7021_s1 + $0x6ac] ss:$16 sps:$4 sm:$0xff]  }
  0x93   :  { %1817 = vmatpush1.bf16.msra.mxu0 %v4724_v52  ;;  %v4808_v52 = vld [vmem:[%s7021_s1 + $0x4a8] ss:$16 sps:$4 sm:$0xff]  }
  0x94   :  { %1858 = vmatpush1.bf16.msra.mxu1 %v4727_v53  ;;  %1818 = vmatprep.subr.bf16.mxu0 %v4732_v54  ;;  %v4819_v53 = vld [vmem:[%s7021_s1 + $0x68c] ss:$16 sps:$4 sm:$0xff]  }
  0x95   :  { %1859 = vmatprep.subr.bf16.mxu1 %v4735_v55  ;;  %v4822_v54 = vld [vmem:[%s7021_s1 + $0x46c] ss:$16 sps:$4 sm:$0xff]  }
  0x96   :  { %v4825_v55 = vld [vmem:[%s7021_s1 + $0x66c] ss:$16 sps:$4 sm:$0xff]  }
  0x97   :  { %1819 = vmatpush1.bf16.msra.mxu0 %v4730_v56  ;;  %v4820_v56 = vld [vmem:[%s7021_s1 + $0x468] ss:$16 sps:$4 sm:$0xff]  }
  0x98   :  { %1860 = vmatpush1.bf16.msra.mxu1 %v4733_v57  ;;  %1820 = vmatprep.subr.bf16.mxu0 %v4738_v58  ;;  %v4823_v57 = vld [vmem:[%s7021_s1 + $0x668] ss:$16 sps:$4 sm:$0xff]   ;;  %v4828_v58 = vld [vmem:[%s7021_s1 + $0x44c] ss:$16 sps:$4 sm:$0xff]  }
  0x99   :  { %1861 = vmatprep.subr.bf16.mxu1 %v4741_v59  ;;  %v4831_v59 = vld [vmem:[%s7021_s1 + $0x64c] ss:$16 sps:$4 sm:$0xff]  }
  0x9b   :  { %1821 = vmatpush1.bf16.msra.mxu0 %v4736_v60  ;;  %v4826_v60 = vld [vmem:[%s7021_s1 + $0x448] ss:$16 sps:$4 sm:$0xff]  }
  0x9c   :  { %1862 = vmatpush1.bf16.msra.mxu1 %v4739_v62  ;;  %1822 = vmatprep.subr.bf16.mxu0 %v4744_v63  ;;  %v4829_v62 = vld [vmem:[%s7021_s1 + $0x648] ss:$16 sps:$4 sm:$0xff]   ;;  %v4834_v63 = vld [vmem:[%s7021_s1 + $0x42c] ss:$16 sps:$4 sm:$0xff]  }
  0x9d   :  { %1863 = vmatprep.subr.bf16.mxu1 %v4747_v0  ;;  %v4837_v0 = vld [vmem:[%s7021_s1 + $0x62c] ss:$16 sps:$4 sm:$0xff]  }
  0x9f   :  { %1823 = vmatpush1.bf16.msra.mxu0 %v4742_v1  ;;  %v4832_v1 = vld [vmem:[%s7021_s1 + $0x428] ss:$16 sps:$4 sm:$0xff]  }
  0xa0   :  { %1864 = vmatpush1.bf16.msra.mxu1 %v4745_v2  ;;  %1824 = vmatprep.subr.bf16.mxu0 %v4750_v4  ;;  %v4835_v2 = vld [vmem:[%s7021_s1 + $0x628] ss:$16 sps:$4 sm:$0xff]   ;;  %v4840_v4 = vld [vmem:[%s7021_s1 + $0x40c] ss:$16 sps:$4 sm:$0xff]  }
  0xa1   :  { %1865 = vmatprep.subr.bf16.mxu1 %v4753_v5  ;;  %v4843_v5 = vld [vmem:[%s7021_s1 + $0x60c] ss:$16 sps:$4 sm:$0xff]  }
  0xa3   :  { %1825 = vmatpush2.bf16.msra.mxu0 %v4748_v6  ;;  %v4838_v6 = vld [vmem:[%s7021_s1 + $0x408] ss:$16 sps:$4 sm:$0xff]  }
  0xa4   :  { %1866 = vmatpush2.bf16.msra.mxu1 %v4751_v7  ;;  %1826 = vmatprep.subr.bf16.mxu0 %v4756_v8  ;;  %v4841_v7 = vld [vmem:[%s7021_s1 + $0x608] ss:$16 sps:$4 sm:$0xff]   ;;  %v4846_v8 = vld [vmem:[%s7021_s1 + $0x5ec] ss:$16 sps:$4 sm:$0xff]  }
  0xa5   :  { %1867 = vmatprep.subr.bf16.mxu1 %v4759_v9  ;;  %v4849_v9 = vld [vmem:[%s7021_s1 + $0x7ec] ss:$16 sps:$4 sm:$0xff]  }
  0xa7   :  { %1827 = vmatpush2.bf16.msra.mxu0 %v4754_v10  ;;  %v4844_v10 = vld [vmem:[%s7021_s1 + $0x5e8] ss:$16 sps:$4 sm:$0xff]  }
  0xa8   :  { %1868 = vmatpush2.bf16.msra.mxu1 %v4757_v11  ;;  %1828 = vmatprep.subr.bf16.mxu0 %v4762_v12  ;;  %v4847_v11 = vld [vmem:[%s7021_s1 + $0x7e8] ss:$16 sps:$4 sm:$0xff]   ;;  %v4852_v12 = vld [vmem:[%s7021_s1 + $0x5cc] ss:$16 sps:$4 sm:$0xff]  }
  0xa9   :  { %1869 = vmatprep.subr.bf16.mxu1 %v4765_v13  ;;  %v4855_v13 = vld [vmem:[%s7021_s1 + $0x7cc] ss:$16 sps:$4 sm:$0xff]  }
  0xab   :  { %1829 = vmatpush2.bf16.msra.mxu0 %v4760_v16  ;;  %v4850_v16 = vld [vmem:[%s7021_s1 + $0x5c8] ss:$16 sps:$4 sm:$0xff]  }
  0xac   :  { %1870 = vmatpush2.bf16.msra.mxu1 %v4763_v17  ;;  %1830 = vmatprep.subr.bf16.mxu0 %v4768_v18  ;;  %v4853_v17 = vld [vmem:[%s7021_s1 + $0x7c8] ss:$16 sps:$4 sm:$0xff]   ;;  %v4858_v18 = vld [vmem:[%s7021_s1 + $0x5ac] ss:$16 sps:$4 sm:$0xff]  }
  0xad   :  { %1871 = vmatprep.subr.bf16.mxu1 %v4771_v19  ;;  %v4861_v19 = vld [vmem:[%s7021_s1 + $0x7ac] ss:$16 sps:$4 sm:$0xff]  }
  0xaf   :  { %1831 = vmatpush2.bf16.msra.mxu0 %v4766_v20  ;;  %v4856_v20 = vld [vmem:[%s7021_s1 + $0x5a8] ss:$16 sps:$4 sm:$0xff]  }
  0xb0   :  { %1872 = vmatpush2.bf16.msra.mxu1 %v4769_v21  ;;  %1832 = vmatprep.subr.bf16.mxu0 %v4774_v24  ;;  %v4859_v21 = vld [vmem:[%s7021_s1 + $0x7a8] ss:$16 sps:$4 sm:$0xff]   ;;  %v4864_v24 = vld [vmem:[%s7021_s1 + $0x58c] ss:$16 sps:$4 sm:$0xff]  }
  0xb1   :  { %1873 = vmatprep.subr.bf16.mxu1 %v4777_v25  ;;  %v4867_v25 = vld [vmem:[%s7021_s1 + $0x78c] ss:$16 sps:$4 sm:$0xff]  }
  0xb3   :  { %1833 = vmatpush2.bf16.msra.mxu0 %v4772_v26  ;;  %v4862_v26 = vld [vmem:[%s7021_s1 + $0x588] ss:$16 sps:$4 sm:$0xff]  }
  0xb4   :  { %1874 = vmatpush2.bf16.msra.mxu1 %v4775_v27  ;;  %1834 = vmatprep.subr.bf16.mxu0 %v4780_v30  ;;  %v4865_v27 = vld [vmem:[%s7021_s1 + $0x788] ss:$16 sps:$4 sm:$0xff]   ;;  %v4870_v30 = vld [vmem:[%s7021_s1 + $0x56c] ss:$16 sps:$4 sm:$0xff]  }
  0xb5   :  { %1875 = vmatprep.subr.bf16.mxu1 %v4783_v31  ;;  %v4873_v31 = vld [vmem:[%s7021_s1 + $0x76c] ss:$16 sps:$4 sm:$0xff]  }
  0xb7   :  { %1835 = vmatpush2.bf16.msra.mxu0 %v4778_v32  ;;  %v4868_v32 = vld [vmem:[%s7021_s1 + $0x568] ss:$16 sps:$4 sm:$0xff]  }
  0xb8   :  { %1876 = vmatpush2.bf16.msra.mxu1 %v4781_v33  ;;  %1836 = vmatprep.subr.bf16.mxu0 %v4786_v34  ;;  %v4871_v33 = vld [vmem:[%s7021_s1 + $0x768] ss:$16 sps:$4 sm:$0xff]   ;;  %v4876_v34 = vld [vmem:[%s7021_s1 + $0x54c] ss:$16 sps:$4 sm:$0xff]  }
  0xb9   :  { %1877 = vmatprep.subr.bf16.mxu1 %v4789_v35  ;;  %v4879_v35 = vld [vmem:[%s7021_s1 + $0x74c] ss:$16 sps:$4 sm:$0xff]  }
  0xbb   :  { %1837 = vmatpush2.bf16.msra.mxu0 %v4784_v38  ;;  %v4874_v38 = vld [vmem:[%s7021_s1 + $0x548] ss:$16 sps:$4 sm:$0xff]  }
  0xbc   :  { %1878 = vmatpush2.bf16.msra.mxu1 %v4787_v39  ;;  %1838 = vmatprep.subr.bf16.mxu0 %v4792_v14  ;;  %v4877_v39 = vld [vmem:[%s7021_s1 + $0x748] ss:$16 sps:$4 sm:$0xff]   ;;  %v4882_v14 = vld [vmem:[%s7021_s1 + $0x52c] ss:$16 sps:$4 sm:$0xff]  }
  0xbd   :  { %1879 = vmatprep.subr.bf16.mxu1 %v4795_v15  ;;  %v4885_v15 = vld [vmem:[%s7021_s1 + $0x72c] ss:$16 sps:$4 sm:$0xff]  }
  0xbf   :  { %1839 = vmatpush2.bf16.msra.mxu0 %v4790_v40  ;;  %v4880_v40 = vld [vmem:[%s7021_s1 + $0x528] ss:$16 sps:$4 sm:$0xff]  }
  0xc0   :  { %1880 = vmatpush2.bf16.msra.mxu1 %v4793_v41  ;;  %1890 = vmatprep.subr.bf16.mxu0 %v4798_v42  ;;  %v4883_v41 = vld [vmem:[%s7021_s1 + $0x728] ss:$16 sps:$4 sm:$0xff]   ;;  %v4888_v42 = vld [vmem:[%s7021_s1 + $0x50c] ss:$16 sps:$4 sm:$0xff]  }
  0xc1   :  { %1931 = vmatprep.subr.bf16.mxu1 %v4801_v44  ;;  %v4891_v44 = vld [vmem:[%s7021_s1 + $0x70c] ss:$16 sps:$4 sm:$0xff]  }
  0xc2   :  { %1841 = vmatmul.mubr.bf16.vlgmr.msra.gmra.mxu0 %v5554_v22  ;;  %v4811_v22 = vld [vmem:[%s7021_s1 + $0x6a8] ss:$16 sps:$4 sm:$0xff]  }
  0xc3   :  { %1882 = vmatmul.mubr.bf16.vlgmr.msra.gmra.mxu1 %v5556_v23  ;;  %1891 = vmatpush1.bf16.msra.mxu0 %v4796_v45  ;;  %v4816_v23 = vld [vmem:[%s7021_s1 + $0x48c] ss:$16 sps:$4 sm:$0xff]   ;;  %v4886_v45 = vld [vmem:[%s7021_s1 + $0x508] ss:$16 sps:$4 sm:$0xff]  }
  0xc4   :  { %1932 = vmatpush1.bf16.msra.mxu1 %v4799_v46  ;;  %1892 = vmatprep.subr.bf16.mxu0 %v4804_v47  ;;  %v4889_v46 = vld [vmem:[%s7021_s1 + $0x708] ss:$16 sps:$4 sm:$0xff]   ;;  %v4894_v47 = vld [vmem:[%s7023_s3 + $0x74] ss:$8 sps:$4 sm:$0xff]  }
  0xc5   :  { %1933 = vmatprep.subr.bf16.mxu1 %v4807_v61  ;;  %1922 = vmatprep.mubr.bf16.mxu0 %v5570_v28  ;;  %v4814_v28 = vld [vmem:[%s7021_s1 + $0x488] ss:$16 sps:$4 sm:$0xff]  }
  0xc6   :  { %1963 = vmatprep.mubr.bf16.mxu1 %v5572_v29  ;;  %v4817_v29 = vld [vmem:[%s7021_s1 + $0x688] ss:$16 sps:$4 sm:$0xff]  }
  0xc7   :  { %1893 = vmatpush1.bf16.msra.mxu0 %v4802_v3  ;;  %v4892_v61 = vld [vmem:[%s7023_s3 + $0x70] ss:$8 sps:$4 sm:$0xff]   ;;  %v4897_v3 = vld [vmem:[%s7023_s3 + $0x64] ss:$8 sps:$4 sm:$0xff]  }
  0xc8   :  { %1934 = vmatpush1.bf16.msra.mxu1 %v4805_v48  ;;  %1894 = vmatprep.subr.bf16.mxu0 %v4810_v50 }
  0xc9   :  { %1935 = vmatprep.subr.bf16.mxu1 %v4813_v51  ;;  %v4895_v51 = vld [vmem:[%s7023_s3 + $0x60] ss:$8 sps:$4 sm:$0xff]  }
  0xcb   :  { %1895 = vmatpush1.bf16.msra.mxu0 %v4808_v52 }
  0xcc   :  { %1936 = vmatpush1.bf16.msra.mxu1 %v4811_v22  ;;  %1896 = vmatprep.subr.bf16.mxu0 %v4816_v23  ;;  %v4900_v23 = vld [vmem:[%s7023_s3 + $0x54] ss:$8 sps:$4 sm:$0xff]  }
  0xcd   :  { %1937 = vmatprep.subr.bf16.mxu1 %v4819_v53 }
  0xcf   :  { %1897 = vmatpush1.bf16.msra.mxu0 %v4814_v28 }
  0xd0   :  { %1938 = vmatpush1.bf16.msra.mxu1 %v4817_v29  ;;  %1898 = vmatprep.subr.bf16.mxu0 %v4822_v54  ;;  %v4903_v54 = vld [vmem:[%s7023_s3 + $0x44] ss:$8 sps:$4 sm:$0xff]  }
  0xd1   :  { %1939 = vmatprep.subr.bf16.mxu1 %v4825_v55  ;;  %v4940_v55 = vld [vmem:[%s7023_s3 + $0x170] ss:$8 sps:$4 sm:$0xff]  }
  0xd3   :  { %1899 = vmatpush1.bf16.msra.mxu0 %v4820_v56  ;;  %v4942_v56 = vld [vmem:[%s7023_s3 + $0x174] ss:$8 sps:$4 sm:$0xff]  }
  0xd4   :  { %1940 = vmatpush1.bf16.msra.mxu1 %v4823_v57  ;;  %1900 = vmatprep.subr.bf16.mxu0 %v4828_v58  ;;  %v4945_v57 = vld [vmem:[%s7023_s3 + $0x164] ss:$8 sps:$4 sm:$0xff]   ;;  %v4901_v58 = vld [vmem:[%s7023_s3 + $0x40] ss:$8 sps:$4 sm:$0xff]  }
  0xd5   :  { %1941 = vmatprep.subr.bf16.mxu1 %v4831_v59  ;;  %v4943_v59 = vld [vmem:[%s7023_s3 + $0x160] ss:$8 sps:$4 sm:$0xff]  }
  0xd7   :  { %1901 = vmatpush1.bf16.msra.mxu0 %v4826_v60  ;;  %v4906_v60 = vld [vmem:[%s7023_s3 + $0x34] ss:$8 sps:$4 sm:$0xff]  }
  0xd8   :  { %1942 = vmatpush1.bf16.msra.mxu1 %v4829_v62  ;;  %1902 = vmatprep.subr.bf16.mxu0 %v4834_v63  ;;  %v4948_v62 = vld [vmem:[%s7023_s3 + $0x154] ss:$8 sps:$4 sm:$0xff]   ;;  %v4904_v63 = vld [vmem:[%s7023_s3 + $0x30] ss:$8 sps:$4 sm:$0xff]  }
  0xd9   :  { %1943 = vmatprep.subr.bf16.mxu1 %v4837_v0  ;;  %v4946_v0 = vld [vmem:[%s7023_s3 + $0x150] ss:$8 sps:$4 sm:$0xff]  }
  0xdb   :  { %1903 = vmatpush1.bf16.msra.mxu0 %v4832_v1  ;;  %v4909_v1 = vld [vmem:[%s7023_s3 + $0x24] ss:$8 sps:$4 sm:$0xff]  }
  0xdc   :  { %1944 = vmatpush1.bf16.msra.mxu1 %v4835_v2  ;;  %1904 = vmatprep.subr.bf16.mxu0 %v4840_v4  ;;  %v4951_v2 = vld [vmem:[%s7023_s3 + $0x144] ss:$8 sps:$4 sm:$0xff]   ;;  %v4907_v4 = vld [vmem:[%s7023_s3 + $0x20] ss:$8 sps:$4 sm:$0xff]  }
  0xdd   :  { %1945 = vmatprep.subr.bf16.mxu1 %v4843_v5  ;;  %v4949_v5 = vld [vmem:[%s7023_s3 + $0x140] ss:$8 sps:$4 sm:$0xff]  }
  0xdf   :  { %1905 = vmatpush1.bf16.msra.mxu0 %v4838_v6  ;;  %v4912_v6 = vld [vmem:[%s7023_s3 + $0x14] ss:$8 sps:$4 sm:$0xff]  }
  0xe0   :  { %1946 = vmatpush1.bf16.msra.mxu1 %v4841_v7  ;;  %1906 = vmatprep.subr.bf16.mxu0 %v4846_v8  ;;  %v4954_v7 = vld [vmem:[%s7023_s3 + $0x134] ss:$8 sps:$4 sm:$0xff]   ;;  %v4910_v8 = vld [vmem:[%s7023_s3 + $0x10] ss:$8 sps:$4 sm:$0xff]  }
  0xe1   :  { %1947 = vmatprep.subr.bf16.mxu1 %v4849_v9  ;;  %v4952_v9 = vld [vmem:[%s7023_s3 + $0x130] ss:$8 sps:$4 sm:$0xff]  }
  0xe3   :  { %1907 = vmatpush2.bf16.msra.mxu0 %v4844_v10  ;;  %v4915_v10 = vld [vmem:[%s7023_s3 + $0x4] ss:$8 sps:$4 sm:$0xff]  }
  0xe4   :  { %1948 = vmatpush2.bf16.msra.mxu1 %v4847_v11  ;;  %1908 = vmatprep.subr.bf16.mxu0 %v4852_v12  ;;  %v4957_v11 = vld [vmem:[%s7023_s3 + $0x124] ss:$8 sps:$4 sm:$0xff]   ;;  %v4913_v12 = vld [vmem:[%s7023_s3] ss:$8 sps:$4 sm:$0xff]  }
  0xe5   :  { %1949 = vmatprep.subr.bf16.mxu1 %v4855_v13  ;;  %v4955_v13 = vld [vmem:[%s7023_s3 + $0x120] ss:$8 sps:$4 sm:$0xff]  }
  0xe7   :  { %1909 = vmatpush2.bf16.msra.mxu0 %v4850_v16  ;;  %v4918_v16 = vld [vmem:[%s7023_s3 + $0xf4] ss:$8 sps:$4 sm:$0xff]  }
  0xe8   :  { %1950 = vmatpush2.bf16.msra.mxu1 %v4853_v17  ;;  %1910 = vmatprep.subr.bf16.mxu0 %v4858_v18  ;;  %v4960_v17 = vld [vmem:[%s7023_s3 + $0x114] ss:$8 sps:$4 sm:$0xff]   ;;  %v4916_v18 = vld [vmem:[%s7023_s3 + $0xf0] ss:$8 sps:$4 sm:$0xff]  }
  0xe9   :  { %1951 = vmatprep.subr.bf16.mxu1 %v4861_v19  ;;  %v4958_v19 = vld [vmem:[%s7023_s3 + $0x110] ss:$8 sps:$4 sm:$0xff]  }
  0xeb   :  { %1911 = vmatpush2.bf16.msra.mxu0 %v4856_v20  ;;  %v4921_v20 = vld [vmem:[%s7023_s3 + $0xe4] ss:$8 sps:$4 sm:$0xff]  }
  0xec   :  { %1952 = vmatpush2.bf16.msra.mxu1 %v4859_v21  ;;  %1912 = vmatprep.subr.bf16.mxu0 %v4864_v24  ;;  %v4963_v21 = vld [vmem:[%s7023_s3 + $0x104] ss:$8 sps:$4 sm:$0xff]   ;;  %v4919_v24 = vld [vmem:[%s7023_s3 + $0xe0] ss:$8 sps:$4 sm:$0xff]  }
  0xed   :  { %1953 = vmatprep.subr.bf16.mxu1 %v4867_v25  ;;  %v4961_v25 = vld [vmem:[%s7023_s3 + $0x100] ss:$8 sps:$4 sm:$0xff]  }
  0xef   :  { %1913 = vmatpush2.bf16.msra.mxu0 %v4862_v26  ;;  %v4924_v26 = vld [vmem:[%s7023_s3 + $0xd4] ss:$8 sps:$4 sm:$0xff]  }
  0xf0   :  { %1954 = vmatpush2.bf16.msra.mxu1 %v4865_v27  ;;  %1914 = vmatprep.subr.bf16.mxu0 %v4870_v30  ;;  %v4966_v27 = vld [vmem:[%s7023_s3 + $0x1f4] ss:$8 sps:$4 sm:$0xff]   ;;  %v4922_v30 = vld [vmem:[%s7023_s3 + $0xd0] ss:$8 sps:$4 sm:$0xff]  }
  0xf1   :  { %1955 = vmatprep.subr.bf16.mxu1 %v4873_v31  ;;  %v4964_v31 = vld [vmem:[%s7023_s3 + $0x1f0] ss:$8 sps:$4 sm:$0xff]  }
  0xf3   :  { %1915 = vmatpush2.bf16.msra.mxu0 %v4868_v32  ;;  %v4927_v32 = vld [vmem:[%s7023_s3 + $0xc4] ss:$8 sps:$4 sm:$0xff]  }
  0xf4   :  { %1956 = vmatpush2.bf16.msra.mxu1 %v4871_v33  ;;  %1916 = vmatprep.subr.bf16.mxu0 %v4876_v34  ;;  %v4969_v33 = vld [vmem:[%s7023_s3 + $0x1e4] ss:$8 sps:$4 sm:$0xff]   ;;  %v4925_v34 = vld [vmem:[%s7023_s3 + $0xc0] ss:$8 sps:$4 sm:$0xff]  }
  0xf5   :  { %1957 = vmatprep.subr.bf16.mxu1 %v4879_v35  ;;  %v4967_v35 = vld [vmem:[%s7023_s3 + $0x1e0] ss:$8 sps:$4 sm:$0xff]  }
  0xf7   :  { %1917 = vmatpush2.bf16.msra.mxu0 %v4874_v38  ;;  %v4930_v38 = vld [vmem:[%s7023_s3 + $0xb4] ss:$8 sps:$4 sm:$0xff]  }
  0xf8   :  { %1958 = vmatpush2.bf16.msra.mxu1 %v4877_v39  ;;  %1918 = vmatprep.subr.bf16.mxu0 %v4882_v14  ;;  %v4972_v39 = vld [vmem:[%s7023_s3 + $0x1d4] ss:$8 sps:$4 sm:$0xff]   ;;  %v4928_v14 = vld [vmem:[%s7023_s3 + $0xb0] ss:$8 sps:$4 sm:$0xff]  }
  0xf9   :  { %1959 = vmatprep.subr.bf16.mxu1 %v4885_v15  ;;  %v4970_v15 = vld [vmem:[%s7023_s3 + $0x1d0] ss:$8 sps:$4 sm:$0xff]  }
  0xfb   :  { %1919 = vmatpush2.bf16.msra.mxu0 %v4880_v40  ;;  %v4933_v40 = vld [vmem:[%s7023_s3 + $0xa4] ss:$8 sps:$4 sm:$0xff]  }
  0xfc   :  { %1960 = vmatpush2.bf16.msra.mxu1 %v4883_v41  ;;  %1920 = vmatprep.subr.bf16.mxu0 %v4888_v42  ;;  %v4975_v41 = vld [vmem:[%s7023_s3 + $0x1c4] ss:$8 sps:$4 sm:$0xff]   ;;  %v4931_v42 = vld [vmem:[%s7023_s3 + $0xa0] ss:$8 sps:$4 sm:$0xff]  }
  0xfd   :  { %1961 = vmatprep.subr.bf16.mxu1 %v4891_v44  ;;  %v4973_v44 = vld [vmem:[%s7023_s3 + $0x1c0] ss:$8 sps:$4 sm:$0xff]  }
  0xff   :  { %1921 = vmatpush2.bf16.msra.mxu0 %v4886_v45  ;;  %v4936_v45 = vld [vmem:[%s7023_s3 + $0x94] ss:$8 sps:$4 sm:$0xff]  }
 0x100   :  { %1962 = vmatpush2.bf16.msra.mxu1 %v4889_v46  ;;  %2376 = vmatprep.subr.bf16.mxu0 %v4894_v47  ;;  %v4978_v46 = vld [vmem:[%s7023_s3 + $0x1b4] ss:$8 sps:$4 sm:$0xff]   ;;  %v6325_v47 = vsub.s32 0, %v5444_v43 }
 0x101   :  { %2417 = vmatprep.subr.bf16.mxu1 %v4942_v56 }
 0x102   :  { %v6161_v48 = vpop.f32.mrf.mxu0  ;;  %1923 = vmatmul.mubr.bf16.vlgmr.msra.gmra.mxu0 %v5760_v36  ;;  %v4898_v36 = vld [vmem:[%s7023_s3 + $0x50] ss:$8 sps:$4 sm:$0xff]  }
 0x103   :  { %v6163_v50 = vpop.f32.mrf.mxu1  ;;  %1964 = vmatmul.mubr.bf16.vlgmr.msra.gmra.mxu1 %v5764_v37  ;;  %2377 = vmatpush1.bf16.msra.mxu0 %v4892_v61  ;;  %v6330_v61 = vld [vmem:[%s7024_s2] sm:$0xf] }
 0x104   :  { %v6170_v52 = vpop.f32.mrf.mxu0  ;;  %2378 = vmatprep.subr.bf16.mxu0 %v4897_v3  ;;  %2418 = vmatpush1.bf16.msra.mxu1 %v4940_v55  ;;  %v6333_v3 = vsub.s32 1, %v5444_v43  ;;  %v4981_v55 = vld [vmem:[%s7023_s3 + $0x1a4] ss:$8 sps:$4 sm:$0xff]  }
 0x105   :  { %v6172_v22 = vpop.f32.mrf.mxu1  ;;  %2419 = vmatprep.subr.bf16.mxu1 %v4945_v57  ;;  %v4979_v57 = vld [vmem:[%s7023_s3 + $0x1a0] ss:$8 sps:$4 sm:$0xff]  }
 0x106   :  { %v1682_v53 = vpop.f32.mrf.mxu0 }
 0x107   :  { %v1723_v28 = vpop.f32.mrf.mxu1  ;;  %2379 = vmatpush1.bf16.msra.mxu0 %v4895_v51  ;;  %v4934_v51 = vld [vmem:[%s7023_s3 + $0x90] ss:$8 sps:$4 sm:$0xff]   ;;  %v4939_v53 = vld [vmem:[%s7023_s3 + $0x84] ss:$8 sps:$4 sm:$0xff]  }
 0x108   :  { %v1683_v37 = vpop.f32.mrf.mxu0  ;;  %2380 = vmatprep.subr.bf16.mxu0 %v4900_v23  ;;  %2420 = vmatpush1.bf16.msra.mxu1 %v4943_v59  ;;  %v4976_v23 = vld [vmem:[%s7023_s3 + $0x1b0] ss:$8 sps:$4 sm:$0xff]   ;;  %v347_v28 = vrot.slane %v6330_v61, %v6325_v47 }
 0x109   :  { %v1724_v29 = vpop.f32.mrf.mxu1  ;;  %2421 = vmatprep.subr.bf16.mxu1 %v4948_v62  ;;  %v4937_v37 = vld [vmem:[%s7023_s3 + $0x80] ss:$8 sps:$4 sm:$0xff]  }
 0x10a   :  { %v1679_v29 = vadd.f32 %v6161_v48, %v347_v28  ;;  %v5015_v28 = vld [vmem:[%s7025_s5 + $0xe0] ss:$8 sps:$4 sm:$0xff]  }
 0x10b   :  { %2381 = vmatpush1.bf16.msra.mxu0 %v4898_v36  ;;  %v351_v36 = vrot.slane %v6330_v61, %v6333_v3 }
 0x10c   :  { %2382 = vmatprep.subr.bf16.mxu0 %v4903_v54  ;;  %2422 = vmatpush1.bf16.msra.mxu1 %v4946_v0  ;;  %v1720_v56 = vadd.f32 %v6163_v50, %v1679_v29  ;;  %v4982_v50 = vld [vmem:[%s7023_s3 + $0x190] ss:$8 sps:$4 sm:$0xff]  }
 0x10d   :  { %2423 = vmatprep.subr.bf16.mxu1 %v4951_v2  ;;  %v1681_v54 = vadd.f32 %v6170_v52, %v351_v36  ;;  %v5020_v36 = vld [vmem:[%s7025_s5 + $0xd4] ss:$8 sps:$4 sm:$0xff]  }
 0x10f   :  { %2383 = vmatpush1.bf16.msra.mxu0 %v4901_v58 }
 0x110   :  { %2384 = vmatprep.subr.bf16.mxu0 %v4906_v60  ;;  %2424 = vmatpush1.bf16.msra.mxu1 %v4949_v5  ;;  %v1722_v60 = vadd.f32 %v6172_v22, %v1681_v54  ;;  %v5018_v54 = vld [vmem:[%s7025_s5 + $0xd0] ss:$8 sps:$4 sm:$0xff]  }
 0x111   :  { %2425 = vmatprep.subr.bf16.mxu1 %v4954_v7 }
 0x113   :  { %2385 = vmatpush1.bf16.msra.mxu0 %v4904_v63  ;;  %v4984_v63 = vld [vmem:[%s7023_s3 + $0x194] ss:$8 sps:$4 sm:$0xff]  }
 0x114   :  { %2386 = vmatprep.subr.bf16.mxu0 %v4909_v1  ;;  %2426 = vmatpush1.bf16.msra.mxu1 %v4952_v9 }
 0x115   :  { %2427 = vmatprep.subr.bf16.mxu1 %v4957_v11 }
 0x117   :  { %2387 = vmatpush1.bf16.msra.mxu0 %v4907_v4 }
 0x118   :  { %2388 = vmatprep.subr.bf16.mxu0 %v4912_v6  ;;  %2428 = vmatpush1.bf16.msra.mxu1 %v4955_v13 }
 0x119   :  { %2429 = vmatprep.subr.bf16.mxu1 %v4960_v17 }
 0x11b   :  { %2389 = vmatpush1.bf16.msra.mxu0 %v4910_v8  ;;  %v4987_v8 = vld [vmem:[%s7023_s3 + $0x184] ss:$8 sps:$4 sm:$0xff]  }
 0x11c   :  { %2390 = vmatprep.subr.bf16.mxu0 %v4915_v10  ;;  %2430 = vmatpush1.bf16.msra.mxu1 %v4958_v19  ;;  %v4985_v10 = vld [vmem:[%s7023_s3 + $0x180] ss:$8 sps:$4 sm:$0xff]  }
 0x11d   :  { %2431 = vmatprep.subr.bf16.mxu1 %v4963_v21 }
 0x11f   :  { %2391 = vmatpush1.bf16.msra.mxu0 %v4913_v12 }
 0x120   :  { %2392 = vmatprep.subr.bf16.mxu0 %v4918_v16  ;;  %2432 = vmatpush1.bf16.msra.mxu1 %v4961_v25  ;;  %v4988_v25 = vld [vmem:[%s7025_s5 + $0x70] ss:$8 sps:$4 sm:$0xff]  }
 0x121   :  { %2433 = vmatprep.subr.bf16.mxu1 %v4966_v27  ;;  %v4993_v27 = vld [vmem:[%s7025_s5 + $0x64] ss:$8 sps:$4 sm:$0xff]  }
 0x123   :  { %2393 = vmatpush2.bf16.msra.mxu0 %v4916_v18 }
 0x124   :  { %2394 = vmatprep.subr.bf16.mxu0 %v4921_v20  ;;  %2434 = vmatpush2.bf16.msra.mxu1 %v4964_v31  ;;  %v4996_v31 = vld [vmem:[%s7025_s5 + $0x54] ss:$8 sps:$4 sm:$0xff]  }
 0x125   :  { %2435 = vmatprep.subr.bf16.mxu1 %v4969_v33  ;;  %v4999_v33 = vld [vmem:[%s7025_s5 + $0x44] ss:$8 sps:$4 sm:$0xff]  }
 0x127   :  { %2395 = vmatpush2.bf16.msra.mxu0 %v4919_v24 }
 0x128   :  { %2396 = vmatprep.subr.bf16.mxu0 %v4924_v26  ;;  %2436 = vmatpush2.bf16.msra.mxu1 %v4967_v35  ;;  %v4990_v26 = vld [vmem:[%s7025_s5 + $0x74] ss:$8 sps:$4 sm:$0xff]  }
 0x129   :  { %2437 = vmatprep.subr.bf16.mxu1 %v4972_v39  ;;  %v5002_v35 = vld [vmem:[%s7025_s5 + $0x34] ss:$8 sps:$4 sm:$0xff]   ;;  %v5005_v39 = vld [vmem:[%s7025_s5 + $0x24] ss:$8 sps:$4 sm:$0xff]  }
 0x12b   :  { %2397 = vmatpush2.bf16.msra.mxu0 %v4922_v30  ;;  %v4991_v30 = vld [vmem:[%s7025_s5 + $0x60] ss:$8 sps:$4 sm:$0xff]  }
 0x12c   :  { %2398 = vmatprep.subr.bf16.mxu0 %v4927_v32  ;;  %2438 = vmatpush2.bf16.msra.mxu1 %v4970_v15  ;;  %v4994_v32 = vld [vmem:[%s7025_s5 + $0x50] ss:$8 sps:$4 sm:$0xff]   ;;  %v5008_v15 = vld [vmem:[%s7025_s5 + $0x14] ss:$8 sps:$4 sm:$0xff]  }
 0x12d   :  { %2439 = vmatprep.subr.bf16.mxu1 %v4975_v41  ;;  %v5011_v41 = vld [vmem:[%s7025_s5 + $0x4] ss:$8 sps:$4 sm:$0xff]  }
 0x12f   :  { %2399 = vmatpush2.bf16.msra.mxu0 %v4925_v34  ;;  %v4997_v34 = vld [vmem:[%s7025_s5 + $0x40] ss:$8 sps:$4 sm:$0xff]  }
 0x130   :  { %2400 = vmatprep.subr.bf16.mxu0 %v4930_v38  ;;  %2440 = vmatpush2.bf16.msra.mxu1 %v4973_v44  ;;  %v5000_v38 = vld [vmem:[%s7025_s5 + $0x30] ss:$8 sps:$4 sm:$0xff]   ;;  %v5014_v44 = vld [vmem:[%s7025_s5 + $0xf4] ss:$8 sps:$4 sm:$0xff]  }
 0x131   :  { %2441 = vmatprep.subr.bf16.mxu1 %v4978_v46  ;;  %v5012_v46 = vld [vmem:[%s7025_s5 + $0xf0] ss:$8 sps:$4 sm:$0xff]  }
 0x133   :  { %2401 = vmatpush2.bf16.msra.mxu0 %v4928_v14  ;;  %v5003_v14 = vld [vmem:[%s7025_s5 + $0x20] ss:$8 sps:$4 sm:$0xff]  }
 0x134   :  { %2402 = vmatprep.subr.bf16.mxu0 %v4933_v40  ;;  %2442 = vmatpush2.bf16.msra.mxu1 %v4976_v23  ;;  %v5006_v40 = vld [vmem:[%s7025_s5 + $0x10] ss:$8 sps:$4 sm:$0xff]   ;;  %v358_v23 = vsub.s32 3, %v5444_v43 }
 0x135   :  { %2443 = vmatprep.subr.bf16.mxu1 %v4981_v55  ;;  %v5023_v55 = vld [vmem:[%s7025_s5 + $0xc4] ss:$8 sps:$4 sm:$0xff]  }
 0x137   :  { %2403 = vmatpush2.bf16.msra.mxu0 %v4931_v42  ;;  %v5009_v42 = vld [vmem:[%s7025_s5] ss:$8 sps:$4 sm:$0xff]  }
 0x138   :  { %2404 = vmatprep.subr.bf16.mxu0 %v4936_v45  ;;  %2444 = vmatpush2.bf16.msra.mxu1 %v4979_v57  ;;  %v354_v45 = vsub.s32 2, %v5444_v43 }
 0x139   :  { %2445 = vmatprep.subr.bf16.mxu1 %v4984_v63 }
 0x13b   :  { %2405 = vmatpush2.bf16.msra.mxu0 %v4934_v51  ;;  %v5017_v51 = vld [vmem:[%s7025_s5 + $0xe4] ss:$8 sps:$4 sm:$0xff]  }
 0x13c   :  { %2406 = vmatprep.subr.bf16.mxu0 %v4939_v53  ;;  %2446 = vmatpush2.bf16.msra.mxu1 %v4982_v50  ;;  %v355_v53 = vrot.slane %v6330_v61, %v354_v45  ;;  %v5024_v50 = vld [vmem:[%s7025_s5 + $0xb0] ss:$8 sps:$4 sm:$0xff]  }
 0x13d   :  { %2447 = vmatprep.subr.bf16.mxu1 %v4987_v8 }
 0x13f   :  { %2407 = vmatpush2.bf16.msra.mxu0 %v4937_v37  ;;  %v359_v37 = vrot.slane %v6330_v61, %v358_v23 }
 0x140   :  { %2448 = vmatpush2.bf16.msra.mxu1 %v4985_v10  ;;  %2666 = vmatprep.subr.bf16.mxu0 %v4990_v26  ;;  %v5027_v10 = vld [vmem:[%s7025_s5 + $0xa0] ss:$8 sps:$4 sm:$0xff]   ;;  %v5038_v26 = vld [vmem:[%s7026_s7 + $0x234] ss:$40 sps:$4 sm:$0xff]  }
 0x141   :  { %3725 = vmatprep.subr.bf16.mxu1 %v5038_v26  ;;  %v5089_v26 = vld [vmem:[%s7026_s7 + $0x4bc] ss:$40 sps:$4 sm:$0xff]  }
 0x142   :  { %v1760_v58 = vpop.f32.mrf.mxu0 }
 0x143   :  { %v1801_v59 = vpop.f32.mrf.mxu1  ;;  %v1761_v62 = vadd.f32 %v1760_v58, %v1720_v56  ;;  %v5021_v58 = vld [vmem:[%s7025_s5 + $0xc0] ss:$8 sps:$4 sm:$0xff]  }
 0x144   :  { %v1762_v48 = vpop.f32.mrf.mxu0 }
 0x145   :  { %v1803_v52 = vpop.f32.mrf.mxu1  ;;  %v1802_v0 = vadd.f32 %v1801_v59, %v1761_v62  ;;  %v1763_v1 = vadd.f32 %v1762_v48, %v1722_v60  ;;  %v5026_v60 = vld [vmem:[%s7025_s5 + $0xb4] ss:$8 sps:$4 sm:$0xff]  }
 0x146   :  { %v1764_v2 = vpop.f32.mrf.mxu0 }
 0x147   :  { %v1805_v4 = vpop.f32.mrf.mxu1  ;;  %v1804_v5 = vadd.f32 %v1803_v52, %v1763_v1  ;;  %v1972_v22 = vmax.f32 %v1802_v0, 0.0 }
 0x148   :  { %v1765_v6 = vpop.f32.mrf.mxu0 }
 0x149   :  { %v1806_v7 = vpop.f32.mrf.mxu1  ;;  %v1973_v9 = vmax.f32 %v1804_v5, 0.0  ;;  %v1976_v12 = vpack.c.bf16 %v1972_v22, %v1972_v22  ;;  %v5029_v5 = vld [vmem:[%s7025_s5 + $0xa4] ss:$8 sps:$4 sm:$0xff]  }
 0x14b   :  { %v1977_v11 = vpack.c.bf16 %v1973_v9, %v1973_v9 }
 0x14d   :  { %2408 = vmatprep.mubr.bf16.mxu0 %v1977_v11 }
 0x14e   :  { %2409 = vmatmul.mubr.bf16.vlgmr.msra.gmra.mxu0 %v1976_v12 }
 0x14f   :  { %2667 = vmatpush1.bf16.msra.mxu0 %v4988_v25  ;;  %v5036_v25 = vld [vmem:[%s7026_s7 + $0x230] ss:$40 sps:$4 sm:$0xff]  }
 0x150   :  { %2668 = vmatprep.subr.bf16.mxu0 %v4993_v27  ;;  %v5041_v27 = vld [vmem:[%s7026_s7 + $0x23c] ss:$40 sps:$4 sm:$0xff]  }
 0x153   :  { %2669 = vmatpush1.bf16.msra.mxu0 %v4991_v30  ;;  %v5044_v30 = vld [vmem:[%s7026_s7 + $0x1e4] ss:$40 sps:$4 sm:$0xff]  }
 0x154   :  { %2670 = vmatprep.subr.bf16.mxu0 %v4996_v31  ;;  %v5042_v31 = vld [vmem:[%s7026_s7 + $0x1e0] ss:$40 sps:$4 sm:$0xff]  }
 0x157   :  { %2671 = vmatpush1.bf16.msra.mxu0 %v4994_v32  ;;  %v5050_v32 = vld [vmem:[%s7026_s7 + $0x194] ss:$40 sps:$4 sm:$0xff]  }
 0x158   :  { %2672 = vmatprep.subr.bf16.mxu0 %v4999_v33  ;;  %v5048_v33 = vld [vmem:[%s7026_s7 + $0x190] ss:$40 sps:$4 sm:$0xff]  }
 0x15b   :  { %2673 = vmatpush1.bf16.msra.mxu0 %v4997_v34  ;;  %v5056_v34 = vld [vmem:[%s7026_s7 + $0x144] ss:$40 sps:$4 sm:$0xff]  }
 0x15c   :  { %2674 = vmatprep.subr.bf16.mxu0 %v5002_v35  ;;  %v5054_v35 = vld [vmem:[%s7026_s7 + $0x140] ss:$40 sps:$4 sm:$0xff]  }
 0x15f   :  { %2675 = vmatpush1.bf16.msra.mxu0 %v5000_v38  ;;  %v5062_v38 = vld [vmem:[%s7026_s7 + $0xf4] ss:$40 sps:$4 sm:$0xff]  }
 0x160   :  { %2676 = vmatprep.subr.bf16.mxu0 %v5005_v39  ;;  %v5060_v39 = vld [vmem:[%s7026_s7 + $0xf0] ss:$40 sps:$4 sm:$0xff]  }
 0x163   :  { %2677 = vmatpush1.bf16.msra.mxu0 %v5003_v14  ;;  %v5068_v14 = vld [vmem:[%s7026_s7 + $0xa4] ss:$40 sps:$4 sm:$0xff]  }
 0x164   :  { %2678 = vmatprep.subr.bf16.mxu0 %v5008_v15  ;;  %v5066_v15 = vld [vmem:[%s7026_s7 + $0xa0] ss:$40 sps:$4 sm:$0xff]  }
 0x167   :  { %2679 = vmatpush1.bf16.msra.mxu0 %v5006_v40  ;;  %v5074_v40 = vld [vmem:[%s7026_s7 + $0x54] ss:$40 sps:$4 sm:$0xff]  }
 0x168   :  { %2680 = vmatprep.subr.bf16.mxu0 %v5011_v41  ;;  %v5072_v41 = vld [vmem:[%s7026_s7 + $0x50] ss:$40 sps:$4 sm:$0xff]  }
 0x16b   :  { %2681 = vmatpush1.bf16.msra.mxu0 %v5009_v42  ;;  %v5080_v42 = vld [vmem:[%s7026_s7 + $0x4] ss:$40 sps:$4 sm:$0xff]  }
 0x16c   :  { %2682 = vmatprep.subr.bf16.mxu0 %v5014_v44  ;;  %v5078_v44 = vld [vmem:[%s7026_s7] ss:$40 sps:$4 sm:$0xff]  }
 0x16f   :  { %2683 = vmatpush2.bf16.msra.mxu0 %v5012_v46  ;;  %v5086_v46 = vld [vmem:[%s7026_s7 + $0x4b4] ss:$40 sps:$4 sm:$0xff]  }
 0x170   :  { %2684 = vmatprep.subr.bf16.mxu0 %v5017_v51  ;;  %v5084_v51 = vld [vmem:[%s7026_s7 + $0x4b0] ss:$40 sps:$4 sm:$0xff]  }
 0x173   :  { %2685 = vmatpush2.bf16.msra.mxu0 %v5015_v28  ;;  %v5090_v28 = vld [vmem:[%s7026_s7 + $0x460] ss:$40 sps:$4 sm:$0xff]  }
 0x174   :  { %2686 = vmatprep.subr.bf16.mxu0 %v5020_v36  ;;  %v5098_v36 = vld [vmem:[%s7026_s7 + $0x414] ss:$40 sps:$4 sm:$0xff]  }
 0x177   :  { %2687 = vmatpush2.bf16.msra.mxu0 %v5018_v54  ;;  %v5102_v54 = vld [vmem:[%s7026_s7 + $0x3c0] ss:$40 sps:$4 sm:$0xff]  }
 0x178   :  { %2688 = vmatprep.subr.bf16.mxu0 %v5023_v55  ;;  %v5110_v55 = vld [vmem:[%s7026_s7 + $0x374] ss:$40 sps:$4 sm:$0xff]  }
 0x17b   :  { %2689 = vmatpush2.bf16.msra.mxu0 %v5021_v58  ;;  %v5114_v58 = vld [vmem:[%s7026_s7 + $0x320] ss:$40 sps:$4 sm:$0xff]  }
 0x17c   :  { %2690 = vmatprep.subr.bf16.mxu0 %v5026_v60 }
 0x17f   :  { %2691 = vmatpush2.bf16.msra.mxu0 %v5024_v50 }
 0x180   :  { %2692 = vmatprep.subr.bf16.mxu0 %v5029_v5 }
 0x182   :  { %v1842_v13 = vpop.f32.mrf.mxu0 }
 0x183   :  { %v1883_v16 = vpop.f32.mrf.mxu1  ;;  %v1843_v29 = vadd.f32 %v1842_v13, %v355_v53  ;;  %2693 = vmatpush2.bf16.msra.mxu0 %v5027_v10  ;;  %v5092_v53 = vld [vmem:[%s7026_s7 + $0x464] ss:$40 sps:$4 sm:$0xff]  }
 0x184   :  { %v1844_v17 = vpop.f32.mrf.mxu0  ;;  %v5053_v10 = vld [vmem:[%s7026_s7 + $0x19c] ss:$40 sps:$4 sm:$0xff]  }
 0x185   :  { %v6373_v18 = vpop.f32.mrf.mxu1  ;;  %v1845_v56 = vadd.f32 %v1844_v17, %v359_v37  ;;  %v1884_v57 = vadd.f32 %v1883_v16, %v1843_v29  ;;  %v5032_v16 = vld [vmem:[%s7025_s5 + $0x94] ss:$8 sps:$4 sm:$0xff]   ;;  %v5030_v17 = vld [vmem:[%s7025_s5 + $0x90] ss:$8 sps:$4 sm:$0xff]   ;;  %v5104_v29 = vld [vmem:[%s7026_s7 + $0x3c4] ss:$40 sps:$4 sm:$0xff]  }
 0x186   :  { %v1846_v19 = vpop.f32.mrf.mxu0  ;;  %2694 = vmatprep.subr.bf16.mxu0 %v5032_v16  ;;  %v5096_v37 = vld [vmem:[%s7026_s7 + $0x410] ss:$40 sps:$4 sm:$0xff]   ;;  %v5065_v16 = vld [vmem:[%s7026_s7 + $0xfc] ss:$40 sps:$4 sm:$0xff]  }
 0x187   :  { %v1887_v20 = vpop.f32.mrf.mxu1  ;;  %v1886_v62 = vadd.f32 %v6373_v18, %v1845_v56  ;;  %2695 = vmatpush2.bf16.msra.mxu0 %v5030_v17  ;;  %v5108_v56 = vld [vmem:[%s7026_s7 + $0x370] ss:$40 sps:$4 sm:$0xff]  }
 0x188   :  { %v1847_v21 = vpop.f32.mrf.mxu0  ;;  %v5035_v20 = vld [vmem:[%s7025_s5 + $0x84] ss:$8 sps:$4 sm:$0xff]   ;;  %v5063_v17 = vld [vmem:[%s7026_s7 + $0xf8] ss:$40 sps:$4 sm:$0xff]  }
 0x189   :  { %v1888_v24 = vpop.f32.mrf.mxu1  ;;  %v5033_v21 = vld [vmem:[%s7025_s5 + $0x80] ss:$8 sps:$4 sm:$0xff]   ;;  %2696 = vmatprep.subr.bf16.mxu0 %v5035_v20  ;;  %v5077_v20 = vld [vmem:[%s7026_s7 + $0x5c] ss:$40 sps:$4 sm:$0xff]  }
 0x18b   :  { %2697 = vmatpush2.bf16.msra.mxu0 %v5033_v21  ;;  %v5075_v21 = vld [vmem:[%s7026_s7 + $0x58] ss:$40 sps:$4 sm:$0xff]  }
 0x18c   :  { %3766 = vmatprep.subr.bf16.mxu0 %v5041_v27  ;;  %v5087_v27 = vld [vmem:[%s7026_s7 + $0x4b8] ss:$40 sps:$4 sm:$0xff]  }
 0x1c2   :  { %v1924_v59 = vpop.f32.mrf.mxu0 }
 0x1c3   :  { %v1965_v61 = vpop.f32.mrf.mxu1  ;;  %v1925_v48 = vadd.f32 %v1924_v59, %v1884_v57  ;;  %v5116_v57 = vld [vmem:[%s7026_s7 + $0x324] ss:$40 sps:$4 sm:$0xff]   ;;  %v2044_v59 = vld [vmem:[%s7027_s4] sm:$0x3] }
 0x1c4   :  { %v1926_v52 = vpop.f32.mrf.mxu0  ;;  %v2053_v60 = vrot.slane %v2044_v59, %v6333_v3 }
 0x1c5   :  { %v1967_v63 = vpop.f32.mrf.mxu1  ;;  %v1966_v0 = vadd.f32 %v1965_v61, %v1925_v48  ;;  %v1927_v1 = vadd.f32 %v1926_v52, %v1886_v62  ;;  %v2049_v61 = vrot.slane %v2044_v59, %v6325_v47 }
 0x1c6   :  { %v1928_v2 = vpop.f32.mrf.mxu0 }
 0x1c7   :  { %v1969_v4 = vpop.f32.mrf.mxu1  ;;  %v1968_v22 = vadd.f32 %v1967_v63, %v1927_v1  ;;  %v1974_v6 = vmax.f32 %v1966_v0, 0.0 }
 0x1c8   :  { %v1929_v7 = vpop.f32.mrf.mxu0 }
 0x1c9   :  { %v1970_v8 = vpop.f32.mrf.mxu1  ;;  %v1975_v9 = vmax.f32 %v1968_v22, 0.0  ;;  %v1978_v12 = vpack.c.bf16 %v1974_v6, %v1974_v6  ;;  %v5039_v6 = vld [vmem:[%s7026_s7 + $0x238] ss:$40 sps:$4 sm:$0xff]  }
 0x1ca   :  { %v5047_v8 = vld [vmem:[%s7026_s7 + $0x1ec] ss:$40 sps:$4 sm:$0xff]  }
 0x1cb   :  { %v1979_v11 = vpack.c.bf16 %v1975_v9, %v1975_v9  ;;  %v5045_v9 = vld [vmem:[%s7026_s7 + $0x1e8] ss:$40 sps:$4 sm:$0xff]  }
 0x1cd   :  { %2449 = vmatprep.mubr.bf16.mxu1 %v1979_v11  ;;  %v5051_v11 = vld [vmem:[%s7026_s7 + $0x198] ss:$40 sps:$4 sm:$0xff]  }
 0x1ce   :  { %2450 = vmatmul.mubr.bf16.vlgmr.msra.gmra.mxu1 %v1978_v12  ;;  %v5059_v12 = vld [vmem:[%s7026_s7 + $0x14c] ss:$40 sps:$4 sm:$0xff]  }
 0x1cf   :  { %3726 = vmatpush1.bf16.msra.mxu1 %v5036_v25  ;;  %v5081_v25 = vld [vmem:[%s7026_s7 + $0x8] ss:$40 sps:$4 sm:$0xff]  }
 0x1d0   :  { %3727 = vmatprep.subr.bf16.mxu1 %v5044_v30  ;;  %v5095_v30 = vld [vmem:[%s7026_s7 + $0x46c] ss:$40 sps:$4 sm:$0xff]  }
 0x1d3   :  { %3728 = vmatpush1.bf16.msra.mxu1 %v5042_v31  ;;  %v5093_v31 = vld [vmem:[%s7026_s7 + $0x468] ss:$40 sps:$4 sm:$0xff]  }
 0x1d4   :  { %3729 = vmatprep.subr.bf16.mxu1 %v5050_v32  ;;  %v5101_v32 = vld [vmem:[%s7026_s7 + $0x41c] ss:$40 sps:$4 sm:$0xff]  }
 0x1d7   :  { %3730 = vmatpush1.bf16.msra.mxu1 %v5048_v33  ;;  %v5099_v33 = vld [vmem:[%s7026_s7 + $0x418] ss:$40 sps:$4 sm:$0xff]  }
 0x1d8   :  { %3731 = vmatprep.subr.bf16.mxu1 %v5056_v34  ;;  %v5107_v34 = vld [vmem:[%s7026_s7 + $0x3cc] ss:$40 sps:$4 sm:$0xff]  }
 0x1db   :  { %3732 = vmatpush1.bf16.msra.mxu1 %v5054_v35  ;;  %v5105_v35 = vld [vmem:[%s7026_s7 + $0x3c8] ss:$40 sps:$4 sm:$0xff]  }
 0x1dc   :  { %3733 = vmatprep.subr.bf16.mxu1 %v5062_v38  ;;  %v5113_v38 = vld [vmem:[%s7026_s7 + $0x37c] ss:$40 sps:$4 sm:$0xff]  }
 0x1df   :  { %3734 = vmatpush1.bf16.msra.mxu1 %v5060_v39  ;;  %v5111_v39 = vld [vmem:[%s7026_s7 + $0x378] ss:$40 sps:$4 sm:$0xff]  }
 0x1e0   :  { %3735 = vmatprep.subr.bf16.mxu1 %v5068_v14  ;;  %v5119_v14 = vld [vmem:[%s7026_s7 + $0x32c] ss:$40 sps:$4 sm:$0xff]  }
 0x1e3   :  { %3736 = vmatpush1.bf16.msra.mxu1 %v5066_v15  ;;  %v5117_v15 = vld [vmem:[%s7026_s7 + $0x328] ss:$40 sps:$4 sm:$0xff]  }
 0x1e4   :  { %3737 = vmatprep.subr.bf16.mxu1 %v5074_v40  ;;  %v5122_v40 = vld [vmem:[%s7026_s7 + $0x2d4] ss:$40 sps:$4 sm:$0xff]  }
 0x1e7   :  { %3738 = vmatpush1.bf16.msra.mxu1 %v5072_v41  ;;  %v5125_v41 = vld [vmem:[%s7026_s7 + $0x2dc] ss:$40 sps:$4 sm:$0xff]  }
 0x1e8   :  { %3739 = vmatprep.subr.bf16.mxu1 %v5080_v42  ;;  %v5120_v42 = vld [vmem:[%s7026_s7 + $0x2d0] ss:$40 sps:$4 sm:$0xff]  }
 0x1eb   :  { %3740 = vmatpush1.bf16.msra.mxu1 %v5078_v44  ;;  %v5123_v44 = vld [vmem:[%s7026_s7 + $0x2d8] ss:$40 sps:$4 sm:$0xff]  }
 0x1ec   :  { %3741 = vmatprep.subr.bf16.mxu1 %v5086_v46  ;;  %v5128_v46 = vld [vmem:[%s7026_s7 + $0x284] ss:$40 sps:$4 sm:$0xff]  }
 0x1ef   :  { %3742 = vmatpush2.bf16.msra.mxu1 %v5084_v51  ;;  %v5131_v51 = vld [vmem:[%s7026_s7 + $0x28c] ss:$40 sps:$4 sm:$0xff]  }
 0x1f0   :  { %3743 = vmatprep.subr.bf16.mxu1 %v5092_v53  ;;  %v5126_v53 = vld [vmem:[%s7026_s7 + $0x280] ss:$40 sps:$4 sm:$0xff]  }
 0x1f3   :  { %3744 = vmatpush2.bf16.msra.mxu1 %v5090_v28  ;;  %v5129_v28 = vld [vmem:[%s7026_s7 + $0x288] ss:$40 sps:$4 sm:$0xff]  }
 0x1f4   :  { %3745 = vmatprep.subr.bf16.mxu1 %v5098_v36  ;;  %v5134_v36 = vld [vmem:[%s7026_s7 + $0x244] ss:$40 sps:$4 sm:$0xff]  }
 0x1f7   :  { %3746 = vmatpush2.bf16.msra.mxu1 %v5096_v37  ;;  %v5137_v37 = vld [vmem:[%s7026_s7 + $0x24c] ss:$40 sps:$4 sm:$0xff]  }
 0x1f8   :  { %3747 = vmatprep.subr.bf16.mxu1 %v5104_v29  ;;  %v2494_v29 = vld [vmem:[%s7028_s6] sm:$0x3] }
 0x1fb   :  { %3748 = vmatpush2.bf16.msra.mxu1 %v5102_v54  ;;  %v2499_v54 = vrot.slane %v2494_v29, %v6325_v47 }
 0x1fc   :  { %3749 = vmatprep.subr.bf16.mxu1 %v5110_v55  ;;  %v2503_v55 = vrot.slane %v2494_v29, %v6333_v3  ;;  %v5201_v29 = vld [vmem:[%s7026_s7 + $0x3d8] ss:$40 sps:$4 sm:$0xff]  }
 0x1ff   :  { %3750 = vmatpush2.bf16.msra.mxu1 %v5108_v56 }
 0x200   :  { %3751 = vmatprep.subr.bf16.mxu1 %v5116_v57 }
 0x203   :  { %3752 = vmatpush2.bf16.msra.mxu1 %v5114_v58 }
 0x204   :  { %3753 = vmatprep.subr.bf16.mxu1 %v5122_v40  ;;  %v5191_v40 = vld [vmem:[%s7026_s7 + $0x47c] ss:$40 sps:$4 sm:$0xff]  }
 0x207   :  { %3754 = vmatpush2.bf16.msra.mxu1 %v5120_v42  ;;  %v5189_v42 = vld [vmem:[%s7026_s7 + $0x478] ss:$40 sps:$4 sm:$0xff]  }
 0x208   :  { %3755 = vmatprep.subr.bf16.mxu1 %v5128_v46  ;;  %v5197_v46 = vld [vmem:[%s7026_s7 + $0x42c] ss:$40 sps:$4 sm:$0xff]  }
 0x20b   :  { %3756 = vmatpush2.bf16.msra.mxu1 %v5126_v53  ;;  %v5195_v53 = vld [vmem:[%s7026_s7 + $0x428] ss:$40 sps:$4 sm:$0xff]  }
 0x20c   :  { %3807 = vmatprep.subr.bf16.mxu1 %v5134_v36  ;;  %v5203_v36 = vld [vmem:[%s7026_s7 + $0x3dc] ss:$40 sps:$4 sm:$0xff]  }
 0x20e   :  { %v6468_v13 = vpop.f32.mrf.mxu0 }
 0x20f   :  { %v2411_v62 = vadd.f32 %v6468_v13, %v2049_v61  ;;  %v5057_v13 = vld [vmem:[%s7026_s7 + $0x148] ss:$40 sps:$4 sm:$0xff]  }
 0x210   :  { %v6476_v18 = vpop.f32.mrf.mxu0 }
 0x211   :  { %v2413_v52 = vadd.f32 %v6476_v18, %v2053_v60  ;;  %v5071_v18 = vld [vmem:[%s7026_s7 + $0xac] ss:$40 sps:$4 sm:$0xff]  }
 0x212   :  { %v2414_v19 = vpop.f32.mrf.mxu0 }
 0x213   :  { %v5069_v19 = vld [vmem:[%s7026_s7 + $0xa8] ss:$40 sps:$4 sm:$0xff]  }
 0x214   :  { %v2415_v24 = vpop.f32.mrf.mxu0 }
 0x215   :  { %v5083_v24 = vld [vmem:[%s7026_s7 + $0xc] ss:$40 sps:$4 sm:$0xff]  }
 0x28e   :  { %v2451_v48 = vpop.f32.mrf.mxu1 }
 0x28f   :  { %v2452_v63 = vadd.f32 %v2451_v48, %v2411_v62 }
 0x290   :  { %v2453_v0 = vpop.f32.mrf.mxu1 }
 0x291   :  { %v2454_v1 = vadd.f32 %v2453_v0, %v2413_v52  ;;  %v2458_v50 = vmax.f32 %v2452_v63, 0.0  ;;  %v5132_v63 = vld [vmem:[%s7026_s7 + $0x240] ss:$40 sps:$4 sm:$0xff]  }
 0x292   :  { %v2455_v2 = vpop.f32.mrf.mxu1  ;;  %v5135_v0 = vld [vmem:[%s7026_s7 + $0x248] ss:$40 sps:$4 sm:$0xff]  }
 0x293   :  { %v2459_v4 = vmax.f32 %v2454_v1, 0.0  ;;  %v2460_v7 = vpack.c.bf16 %v2458_v50, %v2458_v50  ;;  %v5140_v50 = vld [vmem:[%s7026_s7 + $0x1f4] ss:$40 sps:$4 sm:$0xff]  }
 0x294   :  { %v2456_v5 = vpop.f32.mrf.mxu1  ;;  %v5143_v2 = vld [vmem:[%s7026_s7 + $0x1fc] ss:$40 sps:$4 sm:$0xff]  }
 0x295   :  { %v2461_v22 = vpack.c.bf16 %v2459_v4, %v2459_v4  ;;  %v5138_v4 = vld [vmem:[%s7026_s7 + $0x1f0] ss:$40 sps:$4 sm:$0xff]  }
 0x296   :  { %v5141_v5 = vld [vmem:[%s7026_s7 + $0x1f8] ss:$40 sps:$4 sm:$0xff]  }
 0x297   :  { %2698 = vmatprep.mubr.bf16.mxu0 %v2461_v22  ;;  %v5146_v22 = vld [vmem:[%s7026_s7 + $0x1a4] ss:$40 sps:$4 sm:$0xff]  }
 0x298   :  { %2699 = vmatmul.mubr.bf16.vlgmr.msra.gmra.mxu0 %v2460_v7  ;;  %v5144_v7 = vld [vmem:[%s7026_s7 + $0x1a0] ss:$40 sps:$4 sm:$0xff]  }
 0x299   :  { %3767 = vmatpush1.bf16.msra.mxu0 %v5039_v6  ;;  %v5149_v6 = vld [vmem:[%s7026_s7 + $0x1ac] ss:$40 sps:$4 sm:$0xff]  }
 0x29a   :  { %3768 = vmatprep.subr.bf16.mxu0 %v5047_v8  ;;  %v5147_v8 = vld [vmem:[%s7026_s7 + $0x1a8] ss:$40 sps:$4 sm:$0xff]  }
 0x29d   :  { %3769 = vmatpush1.bf16.msra.mxu0 %v5045_v9  ;;  %v5152_v9 = vld [vmem:[%s7026_s7 + $0x154] ss:$40 sps:$4 sm:$0xff]  }
 0x29e   :  { %3770 = vmatprep.subr.bf16.mxu0 %v5053_v10  ;;  %v5155_v10 = vld [vmem:[%s7026_s7 + $0x15c] ss:$40 sps:$4 sm:$0xff]  }
 0x2a1   :  { %3771 = vmatpush1.bf16.msra.mxu0 %v5051_v11  ;;  %v5150_v11 = vld [vmem:[%s7026_s7 + $0x150] ss:$40 sps:$4 sm:$0xff]  }
 0x2a2   :  { %3772 = vmatprep.subr.bf16.mxu0 %v5059_v12  ;;  %v5153_v12 = vld [vmem:[%s7026_s7 + $0x158] ss:$40 sps:$4 sm:$0xff]  }
 0x2a5   :  { %3773 = vmatpush1.bf16.msra.mxu0 %v5057_v13  ;;  %v5158_v13 = vld [vmem:[%s7026_s7 + $0x104] ss:$40 sps:$4 sm:$0xff]  }
 0x2a6   :  { %3774 = vmatprep.subr.bf16.mxu0 %v5065_v16  ;;  %v5161_v16 = vld [vmem:[%s7026_s7 + $0x10c] ss:$40 sps:$4 sm:$0xff]  }
 0x2a9   :  { %3775 = vmatpush1.bf16.msra.mxu0 %v5063_v17  ;;  %v5156_v17 = vld [vmem:[%s7026_s7 + $0x100] ss:$40 sps:$4 sm:$0xff]  }
 0x2aa   :  { %3776 = vmatprep.subr.bf16.mxu0 %v5071_v18  ;;  %v5159_v18 = vld [vmem:[%s7026_s7 + $0x108] ss:$40 sps:$4 sm:$0xff]  }
 0x2ad   :  { %3777 = vmatpush1.bf16.msra.mxu0 %v5069_v19  ;;  %v5164_v19 = vld [vmem:[%s7026_s7 + $0xb4] ss:$40 sps:$4 sm:$0xff]  }
 0x2ae   :  { %3778 = vmatprep.subr.bf16.mxu0 %v5077_v20  ;;  %v5167_v20 = vld [vmem:[%s7026_s7 + $0xbc] ss:$40 sps:$4 sm:$0xff]  }
 0x2b1   :  { %3779 = vmatpush1.bf16.msra.mxu0 %v5075_v21  ;;  %v5162_v21 = vld [vmem:[%s7026_s7 + $0xb0] ss:$40 sps:$4 sm:$0xff]  }
 0x2b2   :  { %3780 = vmatprep.subr.bf16.mxu0 %v5083_v24  ;;  %v5165_v24 = vld [vmem:[%s7026_s7 + $0xb8] ss:$40 sps:$4 sm:$0xff]  }
 0x2b5   :  { %3781 = vmatpush1.bf16.msra.mxu0 %v5081_v25  ;;  %v5170_v25 = vld [vmem:[%s7026_s7 + $0x64] ss:$40 sps:$4 sm:$0xff]  }
 0x2b6   :  { %3782 = vmatprep.subr.bf16.mxu0 %v5089_v26  ;;  %v5173_v26 = vld [vmem:[%s7026_s7 + $0x6c] ss:$40 sps:$4 sm:$0xff]  }
 0x2b9   :  { %3783 = vmatpush2.bf16.msra.mxu0 %v5087_v27  ;;  %v5168_v27 = vld [vmem:[%s7026_s7 + $0x60] ss:$40 sps:$4 sm:$0xff]  }
 0x2ba   :  { %3784 = vmatprep.subr.bf16.mxu0 %v5095_v30  ;;  %v5171_v30 = vld [vmem:[%s7026_s7 + $0x68] ss:$40 sps:$4 sm:$0xff]  }
 0x2bd   :  { %3785 = vmatpush2.bf16.msra.mxu0 %v5093_v31  ;;  %v5176_v31 = vld [vmem:[%s7026_s7 + $0x14] ss:$40 sps:$4 sm:$0xff]  }
 0x2be   :  { %3786 = vmatprep.subr.bf16.mxu0 %v5101_v32  ;;  %v5179_v32 = vld [vmem:[%s7026_s7 + $0x1c] ss:$40 sps:$4 sm:$0xff]  }
 0x2c1   :  { %3787 = vmatpush2.bf16.msra.mxu0 %v5099_v33  ;;  %v5174_v33 = vld [vmem:[%s7026_s7 + $0x10] ss:$40 sps:$4 sm:$0xff]  }
 0x2c2   :  { %3788 = vmatprep.subr.bf16.mxu0 %v5107_v34  ;;  %v5177_v34 = vld [vmem:[%s7026_s7 + $0x18] ss:$40 sps:$4 sm:$0xff]  }
 0x2c5   :  { %3789 = vmatpush2.bf16.msra.mxu0 %v5105_v35  ;;  %v5182_v35 = vld [vmem:[%s7026_s7 + $0x4c4] ss:$40 sps:$4 sm:$0xff]  }
 0x2c6   :  { %3790 = vmatprep.subr.bf16.mxu0 %v5113_v38  ;;  %v5185_v38 = vld [vmem:[%s7026_s7 + $0x4cc] ss:$40 sps:$4 sm:$0xff]  }
 0x2c9   :  { %3791 = vmatpush2.bf16.msra.mxu0 %v5111_v39  ;;  %v5180_v39 = vld [vmem:[%s7026_s7 + $0x4c0] ss:$40 sps:$4 sm:$0xff]  }
 0x2ca   :  { %3792 = vmatprep.subr.bf16.mxu0 %v5119_v14  ;;  %v5183_v14 = vld [vmem:[%s7026_s7 + $0x4c8] ss:$40 sps:$4 sm:$0xff]  }
 0x2cd   :  { %3793 = vmatpush2.bf16.msra.mxu0 %v5117_v15  ;;  %v5188_v15 = vld [vmem:[%s7026_s7 + $0x474] ss:$40 sps:$4 sm:$0xff]  }
 0x2ce   :  { %3794 = vmatprep.subr.bf16.mxu0 %v5125_v41  ;;  %v5186_v41 = vld [vmem:[%s7026_s7 + $0x470] ss:$40 sps:$4 sm:$0xff]  }
 0x2d1   :  { %3795 = vmatpush2.bf16.msra.mxu0 %v5123_v44  ;;  %v5194_v44 = vld [vmem:[%s7026_s7 + $0x424] ss:$40 sps:$4 sm:$0xff]  }
 0x2d2   :  { %3796 = vmatprep.subr.bf16.mxu0 %v5131_v51  ;;  %v5192_v51 = vld [vmem:[%s7026_s7 + $0x420] ss:$40 sps:$4 sm:$0xff]  }
 0x2d5   :  { %3797 = vmatpush2.bf16.msra.mxu0 %v5129_v28  ;;  %v5200_v28 = vld [vmem:[%s7026_s7 + $0x3d4] ss:$40 sps:$4 sm:$0xff]  }
 0x2d6   :  { %3848 = vmatprep.subr.bf16.mxu0 %v5137_v37  ;;  %v5198_v37 = vld [vmem:[%s7026_s7 + $0x3d0] ss:$40 sps:$4 sm:$0xff]  }
 0x358   :  { %v2700_v56 = vpop.f32.mrf.mxu0 }
 0x359   :  { %v2701_v57 = vadd.f32 %v2700_v56, %v2499_v54  ;;  %v5206_v54 = vld [vmem:[%s7026_s7 + $0x384] ss:$40 sps:$4 sm:$0xff]   ;;  %v5204_v56 = vld [vmem:[%s7026_s7 + $0x380] ss:$40 sps:$4 sm:$0xff]  }
 0x35a   :  { %v2702_v58 = vpop.f32.mrf.mxu0 }
 0x35b   :  { %v2703_v59 = vadd.f32 %v2702_v58, %v2503_v55  ;;  %v2707_v61 = vmax.f32 %v2701_v57, 0.0  ;;  %v5209_v55 = vld [vmem:[%s7026_s7 + $0x38c] ss:$40 sps:$4 sm:$0xff]   ;;  %v5207_v57 = vld [vmem:[%s7026_s7 + $0x388] ss:$40 sps:$4 sm:$0xff]  }
 0x35c   :  { %v2704_v60 = vpop.f32.mrf.mxu0  ;;  %v5212_v58 = vld [vmem:[%s7026_s7 + $0x334] ss:$40 sps:$4 sm:$0xff]  }
 0x35d   :  { %v2708_v62 = vmax.f32 %v2703_v59, 0.0  ;;  %v6702_v1 = vpack.c.bf16 %v2707_v61, %v2707_v61  ;;  %v5215_v59 = vld [vmem:[%s7026_s7 + $0x33c] ss:$40 sps:$4 sm:$0xff]   ;;  %v5210_v61 = vld [vmem:[%s7026_s7 + $0x330] ss:$40 sps:$4 sm:$0xff]  }
 0x35e   :  { %v2705_v48 = vpop.f32.mrf.mxu0  ;;  %v5213_v60 = vld [vmem:[%s7026_s7 + $0x338] ss:$40 sps:$4 sm:$0xff]  }
 0x35f   :  { %v6694_v52 = vpack.c.bf16 %v2708_v62, %v2708_v62  ;;  %v5218_v62 = vld [vmem:[%s7026_s7 + $0x2e4] ss:$40 sps:$4 sm:$0xff]  }
 0x360   :  { %v5221_v48 = vld [vmem:[%s7026_s7 + $0x2ec] ss:$40 sps:$4 sm:$0xff]  }
 0x361   :  { %3757 = vmatprep.mubr.bf16.mxu1 %v6694_v52  ;;  %3798 = vmatprep.mubr.bf16.mxu0 %v6694_v52 }
 0x362   :  { %3758 = vmatmul.mubr.bf16.vlgmr.msra.gmra.mxu1 %v6702_v1  ;;  %3799 = vmatmul.mubr.bf16.vlgmr.msra.gmra.mxu0 %v6702_v1 }
 0x363   :  { %3808 = vmatpush1.bf16.msra.mxu1 %v5132_v63  ;;  %3849 = vmatpush1.bf16.msra.mxu0 %v5135_v0  ;;  %v5216_v63 = vld [vmem:[%s7026_s7 + $0x2e0] ss:$40 sps:$4 sm:$0xff]  }
 0x364   :  { %3839 = vmatprep.mubr.bf16.mxu1 %v6694_v52  ;;  %3880 = vmatprep.mubr.bf16.mxu0 %v6694_v52  ;;  %v5219_v0 = vld [vmem:[%s7026_s7 + $0x2e8] ss:$40 sps:$4 sm:$0xff]  }
 0x365   :  { %3809 = vmatprep.subr.bf16.mxu1 %v5140_v50  ;;  %3850 = vmatprep.subr.bf16.mxu0 %v5143_v2  ;;  %v5224_v50 = vld [vmem:[%s7026_s7 + $0x294] ss:$40 sps:$4 sm:$0xff]  }
 0x366   :  { %v5227_v2 = vld [vmem:[%s7026_s7 + $0x29c] ss:$40 sps:$4 sm:$0xff]  }
 0x367   :  { %3810 = vmatpush1.bf16.msra.mxu1 %v5138_v4  ;;  %3851 = vmatpush1.bf16.msra.mxu0 %v5141_v5  ;;  %v5222_v4 = vld [vmem:[%s7026_s7 + $0x290] ss:$40 sps:$4 sm:$0xff]  }
 0x368   :  { %3811 = vmatprep.subr.bf16.mxu1 %v5146_v22  ;;  %3852 = vmatprep.subr.bf16.mxu0 %v5149_v6  ;;  %v5225_v5 = vld [vmem:[%s7026_s7 + $0x298] ss:$40 sps:$4 sm:$0xff]   ;;  %v5230_v22 = vld [vmem:[%s7026_s7 + $0x254] ss:$40 sps:$4 sm:$0xff]  }
 0x369   :  { %v5228_v6 = vld [vmem:[%s7026_s7 + $0x250] ss:$40 sps:$4 sm:$0xff]  }
 0x36b   :  { %3812 = vmatpush1.bf16.msra.mxu1 %v5144_v7  ;;  %3853 = vmatpush1.bf16.msra.mxu0 %v5147_v8  ;;  %v5233_v7 = vld [vmem:[%s7026_s7 + $0x204] ss:$40 sps:$4 sm:$0xff]   ;;  %v5231_v8 = vld [vmem:[%s7026_s7 + $0x200] ss:$40 sps:$4 sm:$0xff]  }
 0x36c   :  { %3813 = vmatprep.subr.bf16.mxu1 %v5152_v9  ;;  %3854 = vmatprep.subr.bf16.mxu0 %v5155_v10  ;;  %v5236_v9 = vld [vmem:[%s7026_s7 + $0x1b4] ss:$40 sps:$4 sm:$0xff]   ;;  %v5234_v10 = vld [vmem:[%s7026_s7 + $0x1b0] ss:$40 sps:$4 sm:$0xff]  }
 0x36f   :  { %3814 = vmatpush1.bf16.msra.mxu1 %v5150_v11  ;;  %3855 = vmatpush1.bf16.msra.mxu0 %v5153_v12  ;;  %v5239_v11 = vld [vmem:[%s7026_s7 + $0x164] ss:$40 sps:$4 sm:$0xff]   ;;  %v5242_v12 = vld [vmem:[%s7026_s7 + $0x114] ss:$40 sps:$4 sm:$0xff]  }
 0x370   :  { %3815 = vmatprep.subr.bf16.mxu1 %v5158_v13  ;;  %3856 = vmatprep.subr.bf16.mxu0 %v5161_v16  ;;  %v5240_v13 = vld [vmem:[%s7026_s7 + $0x110] ss:$40 sps:$4 sm:$0xff]   ;;  %v5245_v16 = vld [vmem:[%s7026_s7 + $0xc4] ss:$40 sps:$4 sm:$0xff]  }
 0x373   :  { %3816 = vmatpush1.bf16.msra.mxu1 %v5156_v17  ;;  %3857 = vmatpush1.bf16.msra.mxu0 %v5159_v18  ;;  %v5243_v17 = vld [vmem:[%s7026_s7 + $0xc0] ss:$40 sps:$4 sm:$0xff]   ;;  %v5248_v18 = vld [vmem:[%s7026_s7 + $0x74] ss:$40 sps:$4 sm:$0xff]  }
 0x374   :  { %3817 = vmatprep.subr.bf16.mxu1 %v5164_v19  ;;  %3858 = vmatprep.subr.bf16.mxu0 %v5167_v20  ;;  %v5246_v19 = vld [vmem:[%s7026_s7 + $0x70] ss:$40 sps:$4 sm:$0xff]   ;;  %v5251_v20 = vld [vmem:[%s7026_s7 + $0x24] ss:$40 sps:$4 sm:$0xff]  }
 0x377   :  { %3818 = vmatpush1.bf16.msra.mxu1 %v5162_v21  ;;  %3859 = vmatpush1.bf16.msra.mxu0 %v5165_v24  ;;  %v5249_v21 = vld [vmem:[%s7026_s7 + $0x20] ss:$40 sps:$4 sm:$0xff]   ;;  %v5254_v24 = vld [vmem:[%s7026_s7 + $0x4d4] ss:$40 sps:$4 sm:$0xff]  }
 0x378   :  { %3819 = vmatprep.subr.bf16.mxu1 %v5170_v25  ;;  %3860 = vmatprep.subr.bf16.mxu0 %v5173_v26  ;;  %v5252_v25 = vld [vmem:[%s7026_s7 + $0x4d0] ss:$40 sps:$4 sm:$0xff]   ;;  %v5257_v26 = vld [vmem:[%s7026_s7 + $0x484] ss:$40 sps:$4 sm:$0xff]  }
 0x37b   :  { %3820 = vmatpush1.bf16.msra.mxu1 %v5168_v27  ;;  %3861 = vmatpush1.bf16.msra.mxu0 %v5171_v30  ;;  %v5255_v27 = vld [vmem:[%s7026_s7 + $0x480] ss:$40 sps:$4 sm:$0xff]   ;;  %v5260_v30 = vld [vmem:[%s7026_s7 + $0x434] ss:$40 sps:$4 sm:$0xff]  }
 0x37c   :  { %3821 = vmatprep.subr.bf16.mxu1 %v5176_v31  ;;  %3862 = vmatprep.subr.bf16.mxu0 %v5179_v32  ;;  %v5258_v31 = vld [vmem:[%s7026_s7 + $0x430] ss:$40 sps:$4 sm:$0xff]   ;;  %v5263_v32 = vld [vmem:[%s7026_s7 + $0x3e4] ss:$40 sps:$4 sm:$0xff]  }
 0x37f   :  { %3822 = vmatpush1.bf16.msra.mxu1 %v5174_v33  ;;  %3863 = vmatpush1.bf16.msra.mxu0 %v5177_v34  ;;  %v5261_v33 = vld [vmem:[%s7026_s7 + $0x3e0] ss:$40 sps:$4 sm:$0xff]   ;;  %v5266_v34 = vld [vmem:[%s7026_s7 + $0x394] ss:$40 sps:$4 sm:$0xff]  }
 0x380   :  { %3823 = vmatprep.subr.bf16.mxu1 %v5182_v35  ;;  %3864 = vmatprep.subr.bf16.mxu0 %v5185_v38  ;;  %v5264_v35 = vld [vmem:[%s7026_s7 + $0x390] ss:$40 sps:$4 sm:$0xff]   ;;  %v5269_v38 = vld [vmem:[%s7026_s7 + $0x344] ss:$40 sps:$4 sm:$0xff]  }
 0x383   :  { %3824 = vmatpush2.bf16.msra.mxu1 %v5180_v39  ;;  %3865 = vmatpush2.bf16.msra.mxu0 %v5183_v14  ;;  %v5267_v39 = vld [vmem:[%s7026_s7 + $0x340] ss:$40 sps:$4 sm:$0xff]   ;;  %v5272_v14 = vld [vmem:[%s7026_s7 + $0x2f4] ss:$40 sps:$4 sm:$0xff]  }
 0x384   :  { %3825 = vmatprep.subr.bf16.mxu1 %v5188_v15  ;;  %3866 = vmatprep.subr.bf16.mxu0 %v5191_v40  ;;  %v5270_v15 = vld [vmem:[%s7026_s7 + $0x2f0] ss:$40 sps:$4 sm:$0xff]   ;;  %v5275_v40 = vld [vmem:[%s7026_s7 + $0x2a4] ss:$40 sps:$4 sm:$0xff]  }
 0x387   :  { %3826 = vmatpush2.bf16.msra.mxu1 %v5186_v41  ;;  %3867 = vmatpush2.bf16.msra.mxu0 %v5189_v42  ;;  %v5273_v41 = vld [vmem:[%s7026_s7 + $0x2a0] ss:$40 sps:$4 sm:$0xff]  }
 0x388   :  { %3827 = vmatprep.subr.bf16.mxu1 %v5194_v44  ;;  %3868 = vmatprep.subr.bf16.mxu0 %v5197_v46  ;;  %v2871_v42 = vld [vmem:[%s7029_s8] sm:$0xff] }
 0x389   :  { %v2878_v44 = vrot.slane %v2871_v42, %v6325_v47  ;;  %v2886_v46 = vrot.slane %v2871_v42, %v354_v45 }
 0x38b   :  { %3828 = vmatpush2.bf16.msra.mxu1 %v5192_v51  ;;  %3869 = vmatpush2.bf16.msra.mxu0 %v5195_v53  ;;  %v2882_v51 = vrot.slane %v2871_v42, %v6333_v3  ;;  %v2890_v53 = vrot.slane %v2871_v42, %v358_v23  ;;  %v2893_v23 = vsub.s32 4, %v5444_v43 }
 0x38c   :  { %3829 = vmatprep.subr.bf16.mxu1 %v5200_v28  ;;  %3870 = vmatprep.subr.bf16.mxu0 %v5203_v36 }
 0x38f   :  { %3830 = vmatpush2.bf16.msra.mxu1 %v5198_v37  ;;  %3871 = vmatpush2.bf16.msra.mxu0 %v5201_v29 }
 0x390   :  { %3831 = vmatprep.subr.bf16.mxu1 %v5206_v54  ;;  %3872 = vmatprep.subr.bf16.mxu0 %v5209_v55 }
 0x393   :  { %3832 = vmatpush2.bf16.msra.mxu1 %v5204_v56  ;;  %3873 = vmatpush2.bf16.msra.mxu0 %v5207_v57 }
 0x394   :  { %3833 = vmatprep.subr.bf16.mxu1 %v5212_v58  ;;  %3874 = vmatprep.subr.bf16.mxu0 %v5215_v59 }
 0x397   :  { %3834 = vmatpush2.bf16.msra.mxu1 %v5210_v61  ;;  %3875 = vmatpush2.bf16.msra.mxu0 %v5213_v60 }
 0x398   :  { %3835 = vmatprep.subr.bf16.mxu1 %v5218_v62  ;;  %3876 = vmatprep.subr.bf16.mxu0 %v5221_v48 }
 0x39b   :  { %3836 = vmatpush2.bf16.msra.mxu1 %v5216_v63  ;;  %3877 = vmatpush2.bf16.msra.mxu0 %v5219_v0  ;;  %v2901_v0 = vsub.s32 6, %v5444_v43 }
 0x39c   :  { %3837 = vmatprep.subr.bf16.mxu1 %v5224_v50  ;;  %3878 = vmatprep.subr.bf16.mxu0 %v5227_v2  ;;  %v2897_v50 = vsub.s32 5, %v5444_v43  ;;  %v2905_v2 = vsub.s32 7, %v5444_v43 }
 0x39f   :  { %3838 = vmatpush2.bf16.msra.mxu1 %v5222_v4  ;;  %3879 = vmatpush2.bf16.msra.mxu0 %v5225_v5  ;;  %v2894_v4 = vrot.slane %v2871_v42, %v2893_v23  ;;  %v2902_v5 = vrot.slane %v2871_v42, %v2901_v0 }
 0x3a0   :  { %3889 = vmatprep.subr.bf16.mxu1 %v5230_v22  ;;  %v2898_v22 = vrot.slane %v2871_v42, %v2897_v50 }
 0x3a2   :  { %3840 = vmatmul.mubr.bf16.vlgmr.msra.gmra.mxu1 %v6702_v1  ;;  %3881 = vmatmul.mubr.bf16.vlgmr.msra.gmra.mxu0 %v6702_v1 }
 0x3a3   :  { %3890 = vmatpush1.bf16.msra.mxu1 %v5228_v6  ;;  %3921 = vmatprep.mubr.bf16.mxu1 %v6694_v52  ;;  %v5237_v52 = vld [vmem:[%s7026_s7 + $0x160] ss:$40 sps:$4 sm:$0xff]   ;;  %v2906_v6 = vrot.slane %v2871_v42, %v2905_v2 }
 0x3a4   :  { %3891 = vmatprep.subr.bf16.mxu1 %v5233_v7 }
 0x3a7   :  { %3892 = vmatpush1.bf16.msra.mxu1 %v5231_v8 }
 0x3a8   :  { %3893 = vmatprep.subr.bf16.mxu1 %v5236_v9 }
 0x3ab   :  { %3894 = vmatpush1.bf16.msra.mxu1 %v5234_v10 }
 0x3ac   :  { %3895 = vmatprep.subr.bf16.mxu1 %v5239_v11 }
 0x3af   :  { %3896 = vmatpush1.bf16.msra.mxu1 %v5237_v52 }
 0x3b0   :  { %3897 = vmatprep.subr.bf16.mxu1 %v5242_v12 }
 0x3b3   :  { %3898 = vmatpush1.bf16.msra.mxu1 %v5240_v13 }
 0x3b4   :  { %3899 = vmatprep.subr.bf16.mxu1 %v5245_v16 }
 0x3b7   :  { %3900 = vmatpush1.bf16.msra.mxu1 %v5243_v17 }
 0x3b8   :  { %3901 = vmatprep.subr.bf16.mxu1 %v5248_v18 }
 0x3bb   :  { %3902 = vmatpush1.bf16.msra.mxu1 %v5246_v19 }
 0x3bc   :  { %3903 = vmatprep.subr.bf16.mxu1 %v5251_v20 }
 0x3bf   :  { %3904 = vmatpush1.bf16.msra.mxu1 %v5249_v21 }
 0x3c0   :  { %3905 = vmatprep.subr.bf16.mxu1 %v5254_v24 }
 0x3c3   :  { %3906 = vmatpush2.bf16.msra.mxu1 %v5252_v25 }
 0x3c4   :  { %3907 = vmatprep.subr.bf16.mxu1 %v5257_v26  ;;  %v2872_v26 = vld [vmem:[%s7029_s8 + $0x8] sm:$0x3] }
 0x3c7   :  { %3908 = vmatpush2.bf16.msra.mxu1 %v5255_v27  ;;  %v2910_v27 = vrot.slane %v2872_v26, %v6325_v47 }
 0x3c8   :  { %3909 = vmatprep.subr.bf16.mxu1 %v5260_v30  ;;  %v2914_v30 = vrot.slane %v2872_v26, %v6333_v3 }
 0x3cb   :  { %3910 = vmatpush2.bf16.msra.mxu1 %v5258_v31 }
 0x3cc   :  { %3911 = vmatprep.subr.bf16.mxu1 %v5263_v32 }
 0x3cf   :  { %3912 = vmatpush2.bf16.msra.mxu1 %v5261_v33 }
 0x3d0   :  { %3913 = vmatprep.subr.bf16.mxu1 %v5266_v34 }
 0x3d3   :  { %3914 = vmatpush2.bf16.msra.mxu1 %v5264_v35 }
 0x3d4   :  { %3915 = vmatprep.subr.bf16.mxu1 %v5269_v38 }
 0x3d7   :  { %3916 = vmatpush2.bf16.msra.mxu1 %v5267_v39 }
 0x3d8   :  { %3917 = vmatprep.subr.bf16.mxu1 %v5272_v14 }
 0x3db   :  { %3918 = vmatpush2.bf16.msra.mxu1 %v5270_v15 }
 0x3dc   :  { %3919 = vmatprep.subr.bf16.mxu1 %v5275_v40 }
 0x3df   :  { %3920 = vmatpush2.bf16.msra.mxu1 %v5273_v41 }
 0x3e2   :  { %3922 = vmatmul.mubr.bf16.vlgmr.msra.gmra.mxu1 %v6702_v1 }
 0x422   :  { %v3759_v28 = vpop.f32.mrf.mxu1  ;;  %v3800_v36 = vpop.f32.mrf.mxu0 }
 0x423   :  { %v3760_v54 = vadd.f32 %v3759_v28, %v2878_v44  ;;  %v3801_v1 = vadd.f32 %v3800_v36, %v2886_v46 }
 0x424   :  { %v3761_v37 = vpop.f32.mrf.mxu1  ;;  %v3802_v29 = vpop.f32.mrf.mxu0 }
 0x425   :  { %v3762_v55 = vadd.f32 %v3761_v37, %v2882_v51  ;;  %v3803_v56 = vadd.f32 %v3802_v29, %v2890_v53 }
 0x426   :  { %v3763_v57 = vpop.f32.mrf.mxu1  ;;  %v3804_v58 = vpop.f32.mrf.mxu0 }
 0x427   :  { %v3940_v59 = vcombine.low %v3760_v54, %v3762_v55  ;;  %v3941_v61 = vcombine.low %v3801_v1, %v3803_v56 }
 0x428   :  { %v3764_v60 = vpop.f32.mrf.mxu1  ;;  %v3805_v62 = vpop.f32.mrf.mxu0 }
 0x429   :  { %v3948_v45 = vrot.slane %v3940_v59, %v5462_v49  ;;  %v3955_v48 = vrot.slane %v3941_v61, %v5462_v49 }
 0x42b   :  { %v3956_v63 = vcombine.low %v3948_v45, %v3955_v48 }
 0x42d   :  { %3985 = vst [vmem:[%s7030_s9] sm:$0xff] %v3956_v63 }
 0x462   :  { %v3841_v7 = vpop.f32.mrf.mxu1  ;;  %v3882_v8 = vpop.f32.mrf.mxu0 }
 0x463   :  { %v3842_v11 = vadd.f32 %v3841_v7, %v2894_v4  ;;  %v3883_v52 = vadd.f32 %v3882_v8, %v2902_v5 }
 0x464   :  { %v3843_v9 = vpop.f32.mrf.mxu1  ;;  %v3884_v10 = vpop.f32.mrf.mxu0 }
 0x465   :  { %v3844_v12 = vadd.f32 %v3843_v9, %v2898_v22  ;;  %v3885_v13 = vadd.f32 %v3884_v10, %v2906_v6 }
 0x466   :  { %v3845_v16 = vpop.f32.mrf.mxu1  ;;  %v3886_v17 = vpop.f32.mrf.mxu0 }
 0x467   :  { %v3957_v18 = vcombine.low %v3842_v11, %v3844_v12  ;;  %v3958_v19 = vcombine.low %v3883_v52, %v3885_v13 }
 0x468   :  { %v3846_v20 = vpop.f32.mrf.mxu1  ;;  %v3887_v21 = vpop.f32.mrf.mxu0 }
 0x469   :  { %v3965_v43 = vrot.slane %v3957_v18, %v5462_v49  ;;  %v3972_v24 = vrot.slane %v3958_v19, %v5462_v49 }
 0x46b   :  { %v3973_v25 = vcombine.low %v3965_v43, %v3972_v24 }
 0x46d   :  { %3986 = vst [vmem:[%s7030_s9 + $0x8] sm:$0xff] %v3973_v25 }
 0x4a2   :  { %v3923_v31 = vpop.f32.mrf.mxu1 }
 0x4a3   :  { %v3924_v33 = vadd.f32 %v3923_v31, %v2910_v27 }
 0x4a4   :  { %v3925_v32 = vpop.f32.mrf.mxu1 }
 0x4a5   :  { %v3926_v34 = vadd.f32 %v3925_v32, %v2914_v30 }
 0x4a6   :  { %v3927_v35 = vpop.f32.mrf.mxu1 }
 0x4a7   :  { %v3974_v38 = vcombine.low %v3924_v33, %v3926_v34 }
 0x4a8   :  { %v3928_v49 = vpop.f32.mrf.mxu1 }
 0x4a9   :  { %4504 = vst.sshfl [vmem:[%s7030_s9 + $0x10] sm:$0x33 pattern:$0x76325410] %v3974_v38 }

</bundles_post_ra>
